<compile_context>
chip_gen: v6e
topology: v6e:2x2x1
jax: 0.10.0
libtpu: 0.0.40
codegen_flags: <defaults>
</compile_context>

<pallas_src>
import functools

import jax
import jax.numpy as jnp
from jax.experimental import pallas as pl
from jax.experimental.pallas import tpu as pltpu


def _round_up(x, m):
    return ((x + m - 1) // m) * m


def _vmem_bytes_estimate(TH, W, Wp, Cp, Ch):
    io = 2 * ((TH * W * Cp + 2 * W * Cp) * 2 + TH * W * Cp * 2)      # dbl-buffered bf16 in/out blocks
    weights = 2 * ((Cp * Ch + 9 * Ch * Cp) * 2 + (Ch + Cp) * 4)      # dbl-buffered weights/biases
    scratch = (TH + 2) * Wp * Ch * 2 + TH * W * Cp * 4               # h3 (bf16) + accumulator (f32)
    temps = 3 * (TH + 2) * Wp * Ch * 4 + 2 * TH * W * Cp * 4         # f32 roll/cast + matmul temporaries
    return io + weights + scratch + temps


def _darknet_block_kernel(xm_ref, xt_ref, xb_ref, w1_ref, b1_ref, w2_ref, b2_ref,
                          o_ref, h3_ref, acc_ref):
    """One (batch, H-tile) grid step.

    xm_ref : (1, TH, W, Cp)  bf16  input tile (channels zero-padded to Cp)
    xt_ref : (1, 1,  W, Cp)  bf16  input row just above the tile (clamped at the top)
    xb_ref : (1, 1,  W, Cp)  bf16  input row just below the tile (clamped at the bottom)
    w1_ref : (Cp, Ch)        bf16  1x1 conv weight, BN1 scale folded in
    b1_ref : (1, Ch)         f32   folded BN1 bias
    w2_ref : (3, 3, Ch, Cp)  bf16  3x3 conv weight (HWIO), BN2 scale folded in
    b2_ref : (1, Cp)         f32   folded BN2 bias
    o_ref  : (1, TH, W, Cp)  bf16  output tile
    h3_ref : (TH+2, Wp, Ch)  bf16  scratch: conv1 output + 1-row halo + zero right pad
    acc_ref: (TH*W, Cp)      f32   scratch: conv2 accumulator
    """
    _, TH, W, Cp = xm_ref.shape
    THp2, Wp, Ch = h3_ref.shape
    t = pl.program_id(1)
    nt = pl.num_programs(1)

    # ---- ConvBN1: 1x1 conv (BN scale folded) + bias + LeakyReLU(0.1).
    def conv1(x2d):                                   # (M, Cp) bf16 -> (M, Ch) f32
        h = jnp.dot(x2d, w1_ref[...], preferred_element_type=jnp.float32)
        h = h + b1_ref[...]
        return jnp.maximum(h, 0.1 * h)

    h_main = conv1(xm_ref[0].reshape(TH * W, Cp))
    h3_ref[1:TH + 1, :W, :] = h_main.reshape(TH, W, Ch).astype(h3_ref.dtype)

    # Halo rows: recompute conv1 on the neighbouring image rows; at the image
    # top/bottom the 3x3 conv's zero-padding row must be exact zeros instead.
    h_top = conv1(xt_ref[0, 0])                       # (W, Ch)
    h_bot = conv1(xb_ref[0, 0])
    h3_ref[0, :W, :] = jnp.where(t > 0, h_top, 0.0).astype(h3_ref.dtype)
    h3_ref[TH + 1, :W, :] = jnp.where(t < nt - 1, h_bot, 0.0).astype(h3_ref.dtype)

    # Right zero-pad strip: the wrap column of the dx=+-1 shifts must be zero.
    # Only the strip + halo rows are rewritten -- never a full-scratch memset.
    h3_ref[:, W:, :] = jnp.zeros((THp2, Wp - W, Ch), h3_ref.dtype)

    # ---- ConvBN2: 3x3 conv (stride 1, pad 1) = 3 column shifts x 3 row slices,
    #      accumulated on the MXU into the f32 scratch, on the W valid columns only.
    h3_bf = h3_ref[...]
    h3_f32 = h3_bf.astype(jnp.float32)
    first = True
    for dx in (-1, 0, 1):
        if dx == 0:
            shifted = h3_bf
        else:
            # Roll at f32 (validated path), wraparound lands in the zero right-pad.
            shifted = pltpu.roll(h3_f32, shift=(-dx) % Wp, axis=1).astype(jnp.bfloat16)
        shifted = shifted[:, :W, :]                   # drop the pad strip before the matmul
        for dy in (-1, 0, 1):
            patch = shifted[1 + dy:1 + dy + TH].reshape(TH * W, Ch)
            contrib = jnp.dot(patch, w2_ref[1 + dy, 1 + dx],
                              preferred_element_type=jnp.float32)
            if first:
                acc_ref[...] = contrib
                first = False
            else:
                acc_ref[...] += contrib

    y = acc_ref[...] + b2_ref[...]
    y = jnp.maximum(y, 0.1 * y)

    # ---- residual add (f32) and bf16 store.
    o_ref[0] = (y.reshape(TH, W, Cp) + xm_ref[0].astype(jnp.float32)).astype(o_ref.dtype)


@functools.partial(jax.jit, static_argnames=("eps", "block_h"))
def darknet_block(x_nchw, params, eps=1e-5, block_h=None):
    """DarknetBlock forward.  x_nchw: (N, Cin, H, W) float32 (PyTorch layout)."""
    (w1, g1, b1, m1, v1, w2, g2, b2, m2, v2) = params
    N, Cin, H, W = x_nchw.shape
    Chid = w1.shape[0]

    Cp = _round_up(Cin, 128)           # padded in/out channels (lane dense)
    Ch = _round_up(Chid, 128)          # padded hidden channels
    Wp = _round_up(W + 1, 16)          # conv2 scratch width (>= W+1, bf16 sublane aligned)

    # Spatial tile height: largest divisor of H whose per-step VMEM footprint stays small.
    if block_h is None:
        block_h = 1
        for th in range(1, H + 1):
            if H % th == 0 and _vmem_bytes_estimate(th, W, Wp, Cp, Ch) <= 12 * 1024 * 1024:
                block_h = th
    TH = block_h
    assert H % TH == 0, f"block_h={TH} must divide H={H}"
    n_tiles = H // TH

    # NCHW f32 -> NHWC bf16, channels zero-padded to Cp.
    x = jnp.transpose(x_nchw, (0, 2, 3, 1))
    x = jnp.pad(x, ((0, 0), (0, 0), (0, 0), (0, Cp - Cin))).astype(jnp.bfloat16)

    # Fold BN (inference) scales into the conv weights; biases stay f32.
    s1 = g1 / jnp.sqrt(v1 + eps)
    s2 = g2 / jnp.sqrt(v2 + eps)

    w1_mat = jnp.transpose(w1[:, :, 0, 0] * s1[:, None], (1, 0))            # (Cin, Chid)
    w1_mat = jnp.pad(w1_mat, ((0, Cp - Cin), (0, Ch - Chid))).astype(jnp.bfloat16)
    b1f = jnp.pad(b1 - m1 * s1, (0, Ch - Chid)).reshape(1, Ch)

    w2_hwio = jnp.transpose(w2 * s2[:, None, None, None], (2, 3, 1, 0))     # (3,3,Chid,Cin)
    w2_hwio = jnp.pad(w2_hwio, ((0, 0), (0, 0), (0, Ch - Chid), (0, Cp - Cin)))
    w2_hwio = w2_hwio.astype(jnp.bfloat16)
    b2f = jnp.pad(b2 - m2 * s2, (0, Cp - Cin)).reshape(1, Cp)

    flops = N * H * W * (2 * Cp * Ch + 2 * 9 * Ch * Cp)
    bytes_accessed = (2 * N * H * W * Cp * 2                  # bf16 activations in + out
                      + (Cp * Ch + 9 * Ch * Cp) * 2           # bf16 weights
                      + (Ch + Cp) * 4)                        # f32 biases
    vmem_limit = int(min(max(1.5 * _vmem_bytes_estimate(TH, W, Wp, Cp, Ch),
                             32 * 1024 * 1024), 64 * 1024 * 1024))

    out_nhwc = pl.pallas_call(
        _darknet_block_kernel,
        out_shape=jax.ShapeDtypeStruct((N, H, W, Cp), jnp.bfloat16),
        grid=(N, n_tiles),
        in_specs=[
            pl.BlockSpec((1, TH, W, Cp), lambda n, t: (n, t, 0, 0)),
            # Halo rows (block height 1 => block index == row index), clamped at the
            # image edges; the kernel zeroes them at the top/bottom boundary tiles.
            pl.BlockSpec((1, 1, W, Cp),
                         lambda n, t: (n, jnp.maximum(t * TH - 1, 0), 0, 0)),
            pl.BlockSpec((1, 1, W, Cp),
                         lambda n, t: (n, jnp.minimum((t + 1) * TH, H - 1), 0, 0)),
            pl.BlockSpec((Cp, Ch), lambda n, t: (0, 0)),
            pl.BlockSpec((1, Ch), lambda n, t: (0, 0)),
            pl.BlockSpec((3, 3, Ch, Cp), lambda n, t: (0, 0, 0, 0)),
            pl.BlockSpec((1, Cp), lambda n, t: (0, 0)),
        ],
        out_specs=pl.BlockSpec((1, TH, W, Cp), lambda n, t: (n, t, 0, 0)),
        scratch_shapes=[pltpu.VMEM((TH + 2, Wp, Ch), jnp.bfloat16),
                        pltpu.VMEM((TH * W, Cp), jnp.float32)],
        compiler_params=pltpu.CompilerParams(
            dimension_semantics=("parallel", "parallel"),
            vmem_limit_bytes=vmem_limit),
        cost_estimate=pl.CostEstimate(flops=flops, transcendentals=0,
                                      bytes_accessed=bytes_accessed),
    )(x, x, x, w1_mat, b1f, w2_hwio, b2f)

    # Drop channel padding, back to f32 NCHW.
    return jnp.transpose(out_nhwc[..., :Cin].astype(jnp.float32), (0, 3, 1, 2))


def reference(x_nchw, params, eps=1e-5):
    """Pure-JAX f32 reference (lax conv, NCHW/OIHW like PyTorch)."""
    (w1, g1, b1, m1, v1, w2, g2, b2, m2, v2) = params

    def convbn(x, w, g, b, m, v, pad):
        y = jax.lax.conv_general_dilated(
            x, w, (1, 1), [(pad, pad), (pad, pad)],
            dimension_numbers=("NCHW", "OIHW", "NCHW"))
        s = g / jnp.sqrt(v + eps)
        y = y * s[None, :, None, None] + (b - m * s)[None, :, None, None]
        return jnp.where(y > 0, y, 0.1 * y)

    h = convbn(x_nchw, w1, g1, b1, m1, v1, 0)
    y = convbn(h, w2, g2, b2, m2, v2, 1)
    return y + x_nchw


def init_params(key, in_channels):
    ch_hid = in_channels // 2
    ks = jax.random.split(key, 10)
    w1 = 0.3 * jax.random.normal(ks[0], (ch_hid, in_channels, 1, 1), jnp.float32)
    g1 = jax.random.uniform(ks[1], (ch_hid,), jnp.float32, 0.5, 1.5)
    b1 = 0.1 * jax.random.normal(ks[2], (ch_hid,), jnp.float32)
    m1 = 0.1 * jax.random.normal(ks[3], (ch_hid,), jnp.float32)
    v1 = jax.random.uniform(ks[4], (ch_hid,), jnp.float32, 0.5, 1.5)
    w2 = 0.3 * jax.random.normal(ks[5], (in_channels, ch_hid, 3, 3), jnp.float32)
    g2 = jax.random.uniform(ks[6], (in_channels,), jnp.float32, 0.5, 1.5)
    b2 = 0.1 * jax.random.normal(ks[7], (in_channels,), jnp.float32)
    m2 = 0.1 * jax.random.normal(ks[8], (in_channels,), jnp.float32)
    v2 = jax.random.uniform(ks[9], (in_channels,), jnp.float32, 0.5, 1.5)
    return (w1, g1, b1, m1, v1, w2, g2, b2, m2, v2)


if __name__ == "__main__":
    key = jax.random.PRNGKey(0)
    k_x, k_p = jax.random.split(key)

    N, C, H, W = 2, 4, 16, 16
    x = jax.random.normal(k_x, (N, C, H, W), jnp.float32)     # PyTorch NCHW input
    params = init_params(k_p, C)

    out = darknet_block(x, params, block_h=8)                 # 2 spatial tiles per image
    out = jax.block_until_ready(out)

    ref = reference(x, params)
    assert out.shape == ref.shape == (N, C, H, W)
    # bf16 activations / weights -> looser tolerance than the f32 reference.
    assert jnp.allclose(out, ref, atol=5e-2, rtol=5e-2), (
        f"max abs err {jnp.max(jnp.abs(out - ref))}")

    print("KERNEL_OK")
</pallas_src>

<mosaic_0001>
module attributes {stable_mosaic.version = 11 : i64} {
  func.func @_darknet_block_kernel(%arg0: i32, %arg1: i32, %arg2: memref<1x8x16x128xbf16, #tpu.memory_space<vmem>>, %arg3: memref<1x1x16x128xbf16, #tpu.memory_space<vmem>>, %arg4: memref<1x1x16x128xbf16, #tpu.memory_space<vmem>>, %arg5: memref<128x128xbf16, #tpu.memory_space<vmem>>, %arg6: memref<1x128xf32, #tpu.memory_space<vmem>>, %arg7: memref<3x3x128x128xbf16, #tpu.memory_space<vmem>>, %arg8: memref<1x128xf32, #tpu.memory_space<vmem>>, %arg9: memref<1x8x16x128xbf16, #tpu.memory_space<vmem>>, %arg10: memref<10x32x128xbf16, #tpu.memory_space<vmem>>, %arg11: memref<128x128xf32, #tpu.memory_space<vmem>>) attributes {dimension_semantics = [#tpu.dimension_semantics<parallel>, #tpu.dimension_semantics<parallel>], iteration_bounds = array<i64: 2, 2>, scalar_prefetch = 0 : i64, scratch_operands = 2 : i64, tpu.core_type = #tpu.core_type<tc>, window_params = [{transform_indices = @transform_0, window_bounds = array<i64: 1, 8, 16, 128>}, {transform_indices = @transform_1, window_bounds = array<i64: 1, 1, 16, 128>}, {transform_indices = @transform_2, window_bounds = array<i64: 1, 1, 16, 128>}, {pipeline_mode = #tpu.pipeline_mode<synchronous>, transform_indices = @transform_3, window_bounds = array<i64: 128, 128>}, {pipeline_mode = #tpu.pipeline_mode<synchronous>, transform_indices = @transform_4, window_bounds = array<i64: 1, 128>}, {pipeline_mode = #tpu.pipeline_mode<synchronous>, transform_indices = @transform_5, window_bounds = array<i64: 3, 3, 128, 128>}, {pipeline_mode = #tpu.pipeline_mode<synchronous>, transform_indices = @transform_6, window_bounds = array<i64: 1, 128>}, {transform_indices = @transform_7, window_bounds = array<i64: 1, 8, 16, 128>}]} {
    %c0 = arith.constant 0 : index
    %c0_0 = arith.constant 0 : index
    %c0_1 = arith.constant 0 : index
    %c0_2 = arith.constant 0 : index
    %0 = vector.load %arg2[%c0, %c0_0, %c0_1, %c0_2] : memref<1x8x16x128xbf16, #tpu.memory_space<vmem>>, vector<1x8x16x128xbf16>
    %1 = vector.shape_cast %0 : vector<1x8x16x128xbf16> to vector<8x16x128xbf16>
    %2 = vector.shape_cast %1 : vector<8x16x128xbf16> to vector<128x128xbf16>
    %c0_3 = arith.constant 0 : index
    %c0_4 = arith.constant 0 : index
    %3 = vector.load %arg5[%c0_3, %c0_4] : memref<128x128xbf16, #tpu.memory_space<vmem>>, vector<128x128xbf16>
    %cst = arith.constant dense<0.000000e+00> : vector<128x128xf32>
    %4 = tpu.matmul %2, %3, %cst {dimension_numbers = #tpu.dot_dimension_numbers<[1], [0], [0], [1], [0, 0, 1, 1], [], []>} : vector<128x128xbf16>, vector<128x128xbf16>, vector<128x128xf32> -> vector<128x128xf32>
    %c0_5 = arith.constant 0 : index
    %c0_6 = arith.constant 0 : index
    %5 = vector.load %arg6[%c0_5, %c0_6] : memref<1x128xf32, #tpu.memory_space<vmem>>, vector<1x128xf32>
    %6 = vector.broadcast %5 : vector<1x128xf32> to vector<128x128xf32>
    %7 = arith.addf %4, %6 : vector<128x128xf32>
    %cst_7 = arith.constant 1.000000e-01 : f32
    %8 = vector.broadcast %cst_7 : f32 to vector<128x128xf32>
    %9 = arith.mulf %8, %7 : vector<128x128xf32>
    %10 = arith.maximumf %7, %9 : vector<128x128xf32>
    %11 = vector.shape_cast %10 : vector<128x128xf32> to vector<8x16x128xf32>
    %12 = arith.truncf %11 : vector<8x16x128xf32> to vector<8x16x128xbf16>
    %c1 = arith.constant 1 : index
    %c0_8 = arith.constant 0 : index
    %c0_9 = arith.constant 0 : index
    %13 = vector.load %arg10[%c1, %c0_8, %c0_9] : memref<10x32x128xbf16, #tpu.memory_space<vmem>>, vector<8x16x128xbf16>
    tpu.vector_store %arg10[%c1, %c0_8, %c0_9], %12 {strides = array<i32>} : memref<10x32x128xbf16, #tpu.memory_space<vmem>>, vector<8x16x128xbf16>,
    %c0_10 = arith.constant 0 : index
    %c0_11 = arith.constant 0 : index
    %c0_12 = arith.constant 0 : index
    %c0_13 = arith.constant 0 : index
    %14 = vector.load %arg3[%c0_10, %c0_11, %c0_12, %c0_13] : memref<1x1x16x128xbf16, #tpu.memory_space<vmem>>, vector<1x1x16x128xbf16>
    %15 = vector.shape_cast %14 : vector<1x1x16x128xbf16> to vector<16x128xbf16>
    %c0_14 = arith.constant 0 : index
    %c0_15 = arith.constant 0 : index
    %16 = vector.load %arg5[%c0_14, %c0_15] : memref<128x128xbf16, #tpu.memory_space<vmem>>, vector<128x128xbf16>
    %cst_16 = arith.constant dense<0.000000e+00> : vector<16x128xf32>
    %17 = tpu.matmul %15, %16, %cst_16 {dimension_numbers = #tpu.dot_dimension_numbers<[1], [0], [0], [1], [0, 0, 1, 1], [], []>} : vector<16x128xbf16>, vector<128x128xbf16>, vector<16x128xf32> -> vector<16x128xf32>
    %c0_17 = arith.constant 0 : index
    %c0_18 = arith.constant 0 : index
    %18 = vector.load %arg6[%c0_17, %c0_18] : memref<1x128xf32, #tpu.memory_space<vmem>>, vector<1x128xf32>
    %19 = vector.broadcast %18 : vector<1x128xf32> to vector<16x128xf32>
    %20 = arith.addf %17, %19 : vector<16x128xf32>
    %cst_19 = arith.constant 1.000000e-01 : f32
    %21 = vector.broadcast %cst_19 : f32 to vector<16x128xf32>
    %22 = arith.mulf %21, %20 : vector<16x128xf32>
    %23 = arith.maximumf %20, %22 : vector<16x128xf32>
    %c0_20 = arith.constant 0 : index
    %c0_21 = arith.constant 0 : index
    %c0_22 = arith.constant 0 : index
    %c0_23 = arith.constant 0 : index
    %24 = vector.load %arg4[%c0_20, %c0_21, %c0_22, %c0_23] : memref<1x1x16x128xbf16, #tpu.memory_space<vmem>>, vector<1x1x16x128xbf16>
    %25 = vector.shape_cast %24 : vector<1x1x16x128xbf16> to vector<16x128xbf16>
    %c0_24 = arith.constant 0 : index
    %c0_25 = arith.constant 0 : index
    %26 = vector.load %arg5[%c0_24, %c0_25] : memref<128x128xbf16, #tpu.memory_space<vmem>>, vector<128x128xbf16>
    %cst_26 = arith.constant dense<0.000000e+00> : vector<16x128xf32>
    %27 = tpu.matmul %25, %26, %cst_26 {dimension_numbers = #tpu.dot_dimension_numbers<[1], [0], [0], [1], [0, 0, 1, 1], [], []>} : vector<16x128xbf16>, vector<128x128xbf16>, vector<16x128xf32> -> vector<16x128xf32>
    %c0_27 = arith.constant 0 : index
    %c0_28 = arith.constant 0 : index
    %28 = vector.load %arg6[%c0_27, %c0_28] : memref<1x128xf32, #tpu.memory_space<vmem>>, vector<1x128xf32>
    %29 = vector.broadcast %28 : vector<1x128xf32> to vector<16x128xf32>
    %30 = arith.addf %27, %29 : vector<16x128xf32>
    %cst_29 = arith.constant 1.000000e-01 : f32
    %31 = vector.broadcast %cst_29 : f32 to vector<16x128xf32>
    %32 = arith.mulf %31, %30 : vector<16x128xf32>
    %33 = arith.maximumf %30, %32 : vector<16x128xf32>
    %c0_i32 = arith.constant 0 : i32
    %34 = arith.cmpi sgt, %arg1, %c0_i32 : i32
    %cst_30 = arith.constant 0.000000e+00 : f32
    %35 = vector.broadcast %cst_30 : f32 to vector<16x128xf32>
    %36 = arith.select %34, %23, %35 : vector<16x128xf32>
    %37 = arith.truncf %36 : vector<16x128xf32> to vector<16x128xbf16>
    %c0_31 = arith.constant 0 : index
    %c0_32 = arith.constant 0 : index
    %c0_33 = arith.constant 0 : index
    %38 = vector.load %arg10[%c0_31, %c0_32, %c0_33] : memref<10x32x128xbf16, #tpu.memory_space<vmem>>, vector<1x16x128xbf16>
    %39 = vector.shape_cast %38 : vector<1x16x128xbf16> to vector<16x128xbf16>
    %40 = vector.shape_cast %37 : vector<16x128xbf16> to vector<1x16x128xbf16>
    tpu.vector_store %arg10[%c0_31, %c0_32, %c0_33], %40 {strides = array<i32>} : memref<10x32x128xbf16, #tpu.memory_space<vmem>>, vector<1x16x128xbf16>,
    %c1_i32 = arith.constant 1 : i32
    %41 = arith.cmpi slt, %arg1, %c1_i32 : i32
    %cst_34 = arith.constant 0.000000e+00 : f32
    %42 = vector.broadcast %cst_34 : f32 to vector<16x128xf32>
    %43 = arith.select %41, %33, %42 : vector<16x128xf32>
    %44 = arith.truncf %43 : vector<16x128xf32> to vector<16x128xbf16>
    %c9 = arith.constant 9 : index
    %c0_35 = arith.constant 0 : index
    %c0_36 = arith.constant 0 : index
    %45 = vector.load %arg10[%c9, %c0_35, %c0_36] : memref<10x32x128xbf16, #tpu.memory_space<vmem>>, vector<1x16x128xbf16>
    %46 = vector.shape_cast %45 : vector<1x16x128xbf16> to vector<16x128xbf16>
    %47 = vector.shape_cast %44 : vector<16x128xbf16> to vector<1x16x128xbf16>
    tpu.vector_store %arg10[%c9, %c0_35, %c0_36], %47 {strides = array<i32>} : memref<10x32x128xbf16, #tpu.memory_space<vmem>>, vector<1x16x128xbf16>,
    %cst_37 = arith.constant 0.000000e+00 : bf16
    %48 = vector.broadcast %cst_37 : bf16 to vector<10x16x128xbf16>
    %c0_38 = arith.constant 0 : index
    %c16 = arith.constant 16 : index
    %c0_39 = arith.constant 0 : index
    %49 = vector.load %arg10[%c0_38, %c16, %c0_39] : memref<10x32x128xbf16, #tpu.memory_space<vmem>>, vector<10x16x128xbf16>
    tpu.vector_store %arg10[%c0_38, %c16, %c0_39], %48 {strides = array<i32>} : memref<10x32x128xbf16, #tpu.memory_space<vmem>>, vector<10x16x128xbf16>,
    %c0_40 = arith.constant 0 : index
    %c0_41 = arith.constant 0 : index
    %c0_42 = arith.constant 0 : index
    %50 = vector.load %arg10[%c0_40, %c0_41, %c0_42] : memref<10x32x128xbf16, #tpu.memory_space<vmem>>, vector<10x32x128xbf16>
    %51 = arith.extf %50 : vector<10x32x128xbf16> to vector<10x32x128xf32>
    %c1_i32_43 = arith.constant 1 : i32
    %52 = tpu.dynamic_rotate %51 by %c1_i32_43 dim 1 : vector<10x32x128xf32>, i32 -> vector<10x32x128xf32>
    %53 = arith.truncf %52 : vector<10x32x128xf32> to vector<10x32x128xbf16>
    %54 = vector.extract_strided_slice %53 {offsets = [0, 0, 0], sizes = [10, 16, 128], strides = [1, 1, 1]} : vector<10x32x128xbf16> to vector<10x16x128xbf16>
    %55 = vector.extract_strided_slice %54 {offsets = [0, 0, 0], sizes = [8, 16, 128], strides = [1, 1, 1]} : vector<10x16x128xbf16> to vector<8x16x128xbf16>
    %56 = vector.shape_cast %55 : vector<8x16x128xbf16> to vector<128x128xbf16>
    %c0_44 = arith.constant 0 : index
    %c0_45 = arith.constant 0 : index
    %c0_46 = arith.constant 0 : index
    %c0_47 = arith.constant 0 : index
    %57 = vector.load %arg7[%c0_44, %c0_45, %c0_46, %c0_47] : memref<3x3x128x128xbf16, #tpu.memory_space<vmem>>, vector<1x1x128x128xbf16>
    %58 = vector.shape_cast %57 : vector<1x1x128x128xbf16> to vector<128x128xbf16>
    %cst_48 = arith.constant dense<0.000000e+00> : vector<128x128xf32>
    %59 = tpu.matmul %56, %58, %cst_48 {dimension_numbers = #tpu.dot_dimension_numbers<[1], [0], [0], [1], [0, 0, 1, 1], [], []>} : vector<128x128xbf16>, vector<128x128xbf16>, vector<128x128xf32> -> vector<128x128xf32>
    %c0_49 = arith.constant 0 : index
    %c0_50 = arith.constant 0 : index
    %60 = vector.load %arg11[%c0_49, %c0_50] : memref<128x128xf32, #tpu.memory_space<vmem>>, vector<128x128xf32>
    tpu.vector_store %arg11[%c0_49, %c0_50], %59 {strides = array<i32>} : memref<128x128xf32, #tpu.memory_space<vmem>>, vector<128x128xf32>,
    %61 = vector.extract_strided_slice %54 {offsets = [1, 0, 0], sizes = [8, 16, 128], strides = [1, 1, 1]} : vector<10x16x128xbf16> to vector<8x16x128xbf16>
    %62 = vector.shape_cast %61 : vector<8x16x128xbf16> to vector<128x128xbf16>
    %c1_51 = arith.constant 1 : index
    %c0_52 = arith.constant 0 : index
    %c0_53 = arith.constant 0 : index
    %c0_54 = arith.constant 0 : index
    %63 = vector.load %arg7[%c1_51, %c0_52, %c0_53, %c0_54] : memref<3x3x128x128xbf16, #tpu.memory_space<vmem>>, vector<1x1x128x128xbf16>
    %64 = vector.shape_cast %63 : vector<1x1x128x128xbf16> to vector<128x128xbf16>
    %cst_55 = arith.constant dense<0.000000e+00> : vector<128x128xf32>
    %65 = tpu.matmul %62, %64, %cst_55 {dimension_numbers = #tpu.dot_dimension_numbers<[1], [0], [0], [1], [0, 0, 1, 1], [], []>} : vector<128x128xbf16>, vector<128x128xbf16>, vector<128x128xf32> -> vector<128x128xf32>
    %c0_56 = arith.constant 0 : index
    %c0_57 = arith.constant 0 : index
    %66 = vector.load %arg11[%c0_56, %c0_57] : memref<128x128xf32, #tpu.memory_space<vmem>>, vector<128x128xf32>
    %67 = arith.addf %66, %65 : vector<128x128xf32>
    %c0_58 = arith.constant 0 : index
    %c0_59 = arith.constant 0 : index
    %68 = vector.load %arg11[%c0_58, %c0_59] : memref<128x128xf32, #tpu.memory_space<vmem>>, vector<128x128xf32>
    tpu.vector_store %arg11[%c0_58, %c0_59], %67 {strides = array<i32>} : memref<128x128xf32, #tpu.memory_space<vmem>>, vector<128x128xf32>,
    %69 = vector.extract_strided_slice %54 {offsets = [2, 0, 0], sizes = [8, 16, 128], strides = [1, 1, 1]} : vector<10x16x128xbf16> to vector<8x16x128xbf16>
    %70 = vector.shape_cast %69 : vector<8x16x128xbf16> to vector<128x128xbf16>
    %c2 = arith.constant 2 : index
    %c0_60 = arith.constant 0 : index
    %c0_61 = arith.constant 0 : index
    %c0_62 = arith.constant 0 : index
    %71 = vector.load %arg7[%c2, %c0_60, %c0_61, %c0_62] : memref<3x3x128x128xbf16, #tpu.memory_space<vmem>>, vector<1x1x128x128xbf16>
    %72 = vector.shape_cast %71 : vector<1x1x128x128xbf16> to vector<128x128xbf16>
    %cst_63 = arith.constant dense<0.000000e+00> : vector<128x128xf32>
    %73 = tpu.matmul %70, %72, %cst_63 {dimension_numbers = #tpu.dot_dimension_numbers<[1], [0], [0], [1], [0, 0, 1, 1], [], []>} : vector<128x128xbf16>, vector<128x128xbf16>, vector<128x128xf32> -> vector<128x128xf32>
    %c0_64 = arith.constant 0 : index
    %c0_65 = arith.constant 0 : index
    %74 = vector.load %arg11[%c0_64, %c0_65] : memref<128x128xf32, #tpu.memory_space<vmem>>, vector<128x128xf32>
    %75 = arith.addf %74, %73 : vector<128x128xf32>
    %c0_66 = arith.constant 0 : index
    %c0_67 = arith.constant 0 : index
    %76 = vector.load %arg11[%c0_66, %c0_67] : memref<128x128xf32, #tpu.memory_space<vmem>>, vector<128x128xf32>
    tpu.vector_store %arg11[%c0_66, %c0_67], %75 {strides = array<i32>} : memref<128x128xf32, #tpu.memory_space<vmem>>, vector<128x128xf32>,
    %77 = vector.extract_strided_slice %50 {offsets = [0, 0, 0], sizes = [10, 16, 128], strides = [1, 1, 1]} : vector<10x32x128xbf16> to vector<10x16x128xbf16>
    %78 = vector.extract_strided_slice %77 {offsets = [0, 0, 0], sizes = [8, 16, 128], strides = [1, 1, 1]} : vector<10x16x128xbf16> to vector<8x16x128xbf16>
    %79 = vector.shape_cast %78 : vector<8x16x128xbf16> to vector<128x128xbf16>
    %c0_68 = arith.constant 0 : index
    %c1_69 = arith.constant 1 : index
    %c0_70 = arith.constant 0 : index
    %c0_71 = arith.constant 0 : index
    %80 = vector.load %arg7[%c0_68, %c1_69, %c0_70, %c0_71] : memref<3x3x128x128xbf16, #tpu.memory_space<vmem>>, vector<1x1x128x128xbf16>
    %81 = vector.shape_cast %80 : vector<1x1x128x128xbf16> to vector<128x128xbf16>
    %cst_72 = arith.constant dense<0.000000e+00> : vector<128x128xf32>
    %82 = tpu.matmul %79, %81, %cst_72 {dimension_numbers = #tpu.dot_dimension_numbers<[1], [0], [0], [1], [0, 0, 1, 1], [], []>} : vector<128x128xbf16>, vector<128x128xbf16>, vector<128x128xf32> -> vector<128x128xf32>
    %c0_73 = arith.constant 0 : index
    %c0_74 = arith.constant 0 : index
    %83 = vector.load %arg11[%c0_73, %c0_74] : memref<128x128xf32, #tpu.memory_space<vmem>>, vector<128x128xf32>
    %84 = arith.addf %83, %82 : vector<128x128xf32>
    %c0_75 = arith.constant 0 : index
    %c0_76 = arith.constant 0 : index
    %85 = vector.load %arg11[%c0_75, %c0_76] : memref<128x128xf32, #tpu.memory_space<vmem>>, vector<128x128xf32>
    tpu.vector_store %arg11[%c0_75, %c0_76], %84 {strides = array<i32>} : memref<128x128xf32, #tpu.memory_space<vmem>>, vector<128x128xf32>,
    %86 = vector.extract_strided_slice %77 {offsets = [1, 0, 0], sizes = [8, 16, 128], strides = [1, 1, 1]} : vector<10x16x128xbf16> to vector<8x16x128xbf16>
    %87 = vector.shape_cast %86 : vector<8x16x128xbf16> to vector<128x128xbf16>
    %c1_77 = arith.constant 1 : index
    %c1_78 = arith.constant 1 : index
    %c0_79 = arith.constant 0 : index
    %c0_80 = arith.constant 0 : index
    %88 = vector.load %arg7[%c1_77, %c1_78, %c0_79, %c0_80] : memref<3x3x128x128xbf16, #tpu.memory_space<vmem>>, vector<1x1x128x128xbf16>
    %89 = vector.shape_cast %88 : vector<1x1x128x128xbf16> to vector<128x128xbf16>
    %cst_81 = arith.constant dense<0.000000e+00> : vector<128x128xf32>
    %90 = tpu.matmul %87, %89, %cst_81 {dimension_numbers = #tpu.dot_dimension_numbers<[1], [0], [0], [1], [0, 0, 1, 1], [], []>} : vector<128x128xbf16>, vector<128x128xbf16>, vector<128x128xf32> -> vector<128x128xf32>
    %c0_82 = arith.constant 0 : index
    %c0_83 = arith.constant 0 : index
    %91 = vector.load %arg11[%c0_82, %c0_83] : memref<128x128xf32, #tpu.memory_space<vmem>>, vector<128x128xf32>
    %92 = arith.addf %91, %90 : vector<128x128xf32>
    %c0_84 = arith.constant 0 : index
    %c0_85 = arith.constant 0 : index
    %93 = vector.load %arg11[%c0_84, %c0_85] : memref<128x128xf32, #tpu.memory_space<vmem>>, vector<128x128xf32>
    tpu.vector_store %arg11[%c0_84, %c0_85], %92 {strides = array<i32>} : memref<128x128xf32, #tpu.memory_space<vmem>>, vector<128x128xf32>,
    %94 = vector.extract_strided_slice %77 {offsets = [2, 0, 0], sizes = [8, 16, 128], strides = [1, 1, 1]} : vector<10x16x128xbf16> to vector<8x16x128xbf16>
    %95 = vector.shape_cast %94 : vector<8x16x128xbf16> to vector<128x128xbf16>
    %c2_86 = arith.constant 2 : index
    %c1_87 = arith.constant 1 : index
    %c0_88 = arith.constant 0 : index
    %c0_89 = arith.constant 0 : index
    %96 = vector.load %arg7[%c2_86, %c1_87, %c0_88, %c0_89] : memref<3x3x128x128xbf16, #tpu.memory_space<vmem>>, vector<1x1x128x128xbf16>
    %97 = vector.shape_cast %96 : vector<1x1x128x128xbf16> to vector<128x128xbf16>
    %cst_90 = arith.constant dense<0.000000e+00> : vector<128x128xf32>
    %98 = tpu.matmul %95, %97, %cst_90 {dimension_numbers = #tpu.dot_dimension_numbers<[1], [0], [0], [1], [0, 0, 1, 1], [], []>} : vector<128x128xbf16>, vector<128x128xbf16>, vector<128x128xf32> -> vector<128x128xf32>
    %c0_91 = arith.constant 0 : index
    %c0_92 = arith.constant 0 : index
    %99 = vector.load %arg11[%c0_91, %c0_92] : memref<128x128xf32, #tpu.memory_space<vmem>>, vector<128x128xf32>
    %100 = arith.addf %99, %98 : vector<128x128xf32>
    %c0_93 = arith.constant 0 : index
    %c0_94 = arith.constant 0 : index
    %101 = vector.load %arg11[%c0_93, %c0_94] : memref<128x128xf32, #tpu.memory_space<vmem>>, vector<128x128xf32>
    tpu.vector_store %arg11[%c0_93, %c0_94], %100 {strides = array<i32>} : memref<128x128xf32, #tpu.memory_space<vmem>>, vector<128x128xf32>,
    %c31_i32 = arith.constant 31 : i32
    %102 = tpu.dynamic_rotate %51 by %c31_i32 dim 1 : vector<10x32x128xf32>, i32 -> vector<10x32x128xf32>
    %103 = arith.truncf %102 : vector<10x32x128xf32> to vector<10x32x128xbf16>
    %104 = vector.extract_strided_slice %103 {offsets = [0, 0, 0], sizes = [10, 16, 128], strides = [1, 1, 1]} : vector<10x32x128xbf16> to vector<10x16x128xbf16>
    %105 = vector.extract_strided_slice %104 {offsets = [0, 0, 0], sizes = [8, 16, 128], strides = [1, 1, 1]} : vector<10x16x128xbf16> to vector<8x16x128xbf16>
    %106 = vector.shape_cast %105 : vector<8x16x128xbf16> to vector<128x128xbf16>
    %c0_95 = arith.constant 0 : index
    %c2_96 = arith.constant 2 : index
    %c0_97 = arith.constant 0 : index
    %c0_98 = arith.constant 0 : index
    %107 = vector.load %arg7[%c0_95, %c2_96, %c0_97, %c0_98] : memref<3x3x128x128xbf16, #tpu.memory_space<vmem>>, vector<1x1x128x128xbf16>
    %108 = vector.shape_cast %107 : vector<1x1x128x128xbf16> to vector<128x128xbf16>
    %cst_99 = arith.constant dense<0.000000e+00> : vector<128x128xf32>
    %109 = tpu.matmul %106, %108, %cst_99 {dimension_numbers = #tpu.dot_dimension_numbers<[1], [0], [0], [1], [0, 0, 1, 1], [], []>} : vector<128x128xbf16>, vector<128x128xbf16>, vector<128x128xf32> -> vector<128x128xf32>
    %c0_100 = arith.constant 0 : index
    %c0_101 = arith.constant 0 : index
    %110 = vector.load %arg11[%c0_100, %c0_101] : memref<128x128xf32, #tpu.memory_space<vmem>>, vector<128x128xf32>
    %111 = arith.addf %110, %109 : vector<128x128xf32>
    %c0_102 = arith.constant 0 : index
    %c0_103 = arith.constant 0 : index
    %112 = vector.load %arg11[%c0_102, %c0_103] : memref<128x128xf32, #tpu.memory_space<vmem>>, vector<128x128xf32>
    tpu.vector_store %arg11[%c0_102, %c0_103], %111 {strides = array<i32>} : memref<128x128xf32, #tpu.memory_space<vmem>>, vector<128x128xf32>,
    %113 = vector.extract_strided_slice %104 {offsets = [1, 0, 0], sizes = [8, 16, 128], strides = [1, 1, 1]} : vector<10x16x128xbf16> to vector<8x16x128xbf16>
    %114 = vector.shape_cast %113 : vector<8x16x128xbf16> to vector<128x128xbf16>
    %c1_104 = arith.constant 1 : index
    %c2_105 = arith.constant 2 : index
    %c0_106 = arith.constant 0 : index
    %c0_107 = arith.constant 0 : index
    %115 = vector.load %arg7[%c1_104, %c2_105, %c0_106, %c0_107] : memref<3x3x128x128xbf16, #tpu.memory_space<vmem>>, vector<1x1x128x128xbf16>
    %116 = vector.shape_cast %115 : vector<1x1x128x128xbf16> to vector<128x128xbf16>
    %cst_108 = arith.constant dense<0.000000e+00> : vector<128x128xf32>
    %117 = tpu.matmul %114, %116, %cst_108 {dimension_numbers = #tpu.dot_dimension_numbers<[1], [0], [0], [1], [0, 0, 1, 1], [], []>} : vector<128x128xbf16>, vector<128x128xbf16>, vector<128x128xf32> -> vector<128x128xf32>
    %c0_109 = arith.constant 0 : index
    %c0_110 = arith.constant 0 : index
    %118 = vector.load %arg11[%c0_109, %c0_110] : memref<128x128xf32, #tpu.memory_space<vmem>>, vector<128x128xf32>
    %119 = arith.addf %118, %117 : vector<128x128xf32>
    %c0_111 = arith.constant 0 : index
    %c0_112 = arith.constant 0 : index
    %120 = vector.load %arg11[%c0_111, %c0_112] : memref<128x128xf32, #tpu.memory_space<vmem>>, vector<128x128xf32>
    tpu.vector_store %arg11[%c0_111, %c0_112], %119 {strides = array<i32>} : memref<128x128xf32, #tpu.memory_space<vmem>>, vector<128x128xf32>,
    %121 = vector.extract_strided_slice %104 {offsets = [2, 0, 0], sizes = [8, 16, 128], strides = [1, 1, 1]} : vector<10x16x128xbf16> to vector<8x16x128xbf16>
    %122 = vector.shape_cast %121 : vector<8x16x128xbf16> to vector<128x128xbf16>
    %c2_113 = arith.constant 2 : index
    %c2_114 = arith.constant 2 : index
    %c0_115 = arith.constant 0 : index
    %c0_116 = arith.constant 0 : index
    %123 = vector.load %arg7[%c2_113, %c2_114, %c0_115, %c0_116] : memref<3x3x128x128xbf16, #tpu.memory_space<vmem>>, vector<1x1x128x128xbf16>
    %124 = vector.shape_cast %123 : vector<1x1x128x128xbf16> to vector<128x128xbf16>
    %cst_117 = arith.constant dense<0.000000e+00> : vector<128x128xf32>
    %125 = tpu.matmul %122, %124, %cst_117 {dimension_numbers = #tpu.dot_dimension_numbers<[1], [0], [0], [1], [0, 0, 1, 1], [], []>} : vector<128x128xbf16>, vector<128x128xbf16>, vector<128x128xf32> -> vector<128x128xf32>
    %c0_118 = arith.constant 0 : index
    %c0_119 = arith.constant 0 : index
    %126 = vector.load %arg11[%c0_118, %c0_119] : memref<128x128xf32, #tpu.memory_space<vmem>>, vector<128x128xf32>
    %127 = arith.addf %126, %125 : vector<128x128xf32>
    %c0_120 = arith.constant 0 : index
    %c0_121 = arith.constant 0 : index
    %128 = vector.load %arg11[%c0_120, %c0_121] : memref<128x128xf32, #tpu.memory_space<vmem>>, vector<128x128xf32>
    tpu.vector_store %arg11[%c0_120, %c0_121], %127 {strides = array<i32>} : memref<128x128xf32, #tpu.memory_space<vmem>>, vector<128x128xf32>,
    %c0_122 = arith.constant 0 : index
    %c0_123 = arith.constant 0 : index
    %129 = vector.load %arg11[%c0_122, %c0_123] : memref<128x128xf32, #tpu.memory_space<vmem>>, vector<128x128xf32>
    %c0_124 = arith.constant 0 : index
    %c0_125 = arith.constant 0 : index
    %130 = vector.load %arg8[%c0_124, %c0_125] : memref<1x128xf32, #tpu.memory_space<vmem>>, vector<1x128xf32>
    %131 = vector.broadcast %130 : vector<1x128xf32> to vector<128x128xf32>
    %132 = arith.addf %129, %131 : vector<128x128xf32>
    %cst_126 = arith.constant 1.000000e-01 : f32
    %133 = vector.broadcast %cst_126 : f32 to vector<128x128xf32>
    %134 = arith.mulf %133, %132 : vector<128x128xf32>
    %135 = arith.maximumf %132, %134 : vector<128x128xf32>
    %136 = vector.shape_cast %135 : vector<128x128xf32> to vector<8x16x128xf32>
    %c0_127 = arith.constant 0 : index
    %c0_128 = arith.constant 0 : index
    %c0_129 = arith.constant 0 : index
    %c0_130 = arith.constant 0 : index
    %137 = vector.load %arg2[%c0_127, %c0_128, %c0_129, %c0_130] : memref<1x8x16x128xbf16, #tpu.memory_space<vmem>>, vector<1x8x16x128xbf16>
    %138 = vector.shape_cast %137 : vector<1x8x16x128xbf16> to vector<8x16x128xbf16>
    %139 = arith.extf %138 : vector<8x16x128xbf16> to vector<8x16x128xf32>
    %140 = arith.addf %136, %139 : vector<8x16x128xf32>
    %141 = arith.truncf %140 : vector<8x16x128xf32> to vector<8x16x128xbf16>
    %c0_131 = arith.constant 0 : index
    %c0_132 = arith.constant 0 : index
    %c0_133 = arith.constant 0 : index
    %c0_134 = arith.constant 0 : index
    %142 = vector.load %arg9[%c0_131, %c0_132, %c0_133, %c0_134] : memref<1x8x16x128xbf16, #tpu.memory_space<vmem>>, vector<1x8x16x128xbf16>
    %143 = vector.shape_cast %142 : vector<1x8x16x128xbf16> to vector<8x16x128xbf16>
    %144 = vector.shape_cast %141 : vector<8x16x128xbf16> to vector<1x8x16x128xbf16>
    tpu.vector_store %arg9[%c0_131, %c0_132, %c0_133, %c0_134], %144 {strides = array<i32>} : memref<1x8x16x128xbf16, #tpu.memory_space<vmem>>, vector<1x8x16x128xbf16>,
    return
  }
  func.func @transform_0(%arg0: i32, %arg1: i32) -> (i32, i32, i32, i32) {
    %c0_i32 = arith.constant 0 : i32
    %c0_i32_0 = arith.constant 0 : i32
    %c0_i32_1 = arith.constant 0 : i32
    return %arg0, %arg1, %c0_i32, %c0_i32_0 : i32, i32, i32, i32
  }
  func.func @transform_1(%arg0: i32, %arg1: i32) -> (i32, i32, i32, i32) {
    %c8_i32 = arith.constant 8 : i32
    %0 = arith.muli %arg1, %c8_i32 : i32
    %c1_i32 = arith.constant 1 : i32
    %1 = arith.subi %0, %c1_i32 : i32
    %c0_i32 = arith.constant 0 : i32
    %2 = arith.maxsi %1, %c0_i32 : i32
    %c0_i32_0 = arith.constant 0 : i32
    %c0_i32_1 = arith.constant 0 : i32
    %c0_i32_2 = arith.constant 0 : i32
    return %arg0, %2, %c0_i32_0, %c0_i32_1 : i32, i32, i32, i32
  }
  func.func @transform_2(%arg0: i32, %arg1: i32) -> (i32, i32, i32, i32) {
    %c1_i32 = arith.constant 1 : i32
    %0 = arith.addi %arg1, %c1_i32 : i32
    %c8_i32 = arith.constant 8 : i32
    %1 = arith.muli %0, %c8_i32 : i32
    %c15_i32 = arith.constant 15 : i32
    %2 = arith.minsi %1, %c15_i32 : i32
    %c0_i32 = arith.constant 0 : i32
    %c0_i32_0 = arith.constant 0 : i32
    %c0_i32_1 = arith.constant 0 : i32
    return %arg0, %2, %c0_i32, %c0_i32_0 : i32, i32, i32, i32
  }
  func.func @transform_3(%arg0: i32, %arg1: i32) -> (i32, i32) {
    %c0_i32 = arith.constant 0 : i32
    %c0_i32_0 = arith.constant 0 : i32
    %c0_i32_1 = arith.constant 0 : i32
    return %c0_i32, %c0_i32_0 : i32, i32
  }
  func.func @transform_4(%arg0: i32, %arg1: i32) -> (i32, i32) {
    %c0_i32 = arith.constant 0 : i32
    %c0_i32_0 = arith.constant 0 : i32
    %c0_i32_1 = arith.constant 0 : i32
    return %c0_i32, %c0_i32_0 : i32, i32
  }
  func.func @transform_5(%arg0: i32, %arg1: i32) -> (i32, i32, i32, i32) {
    %c0_i32 = arith.constant 0 : i32
    %c0_i32_0 = arith.constant 0 : i32
    %c0_i32_1 = arith.constant 0 : i32
    %c0_i32_2 = arith.constant 0 : i32
    %c0_i32_3 = arith.constant 0 : i32
    return %c0_i32, %c0_i32_0, %c0_i32_1, %c0_i32_2 : i32, i32, i32, i32
  }
  func.func @transform_6(%arg0: i32, %arg1: i32) -> (i32, i32) {
    %c0_i32 = arith.constant 0 : i32
    %c0_i32_0 = arith.constant 0 : i32
    %c0_i32_1 = arith.constant 0 : i32
    return %c0_i32, %c0_i32_0 : i32, i32
  }
  func.func @transform_7(%arg0: i32, %arg1: i32) -> (i32, i32, i32, i32) {
    %c0_i32 = arith.constant 0 : i32
    %c0_i32_0 = arith.constant 0 : i32
    %c0_i32_1 = arith.constant 0 : i32
    return %arg0, %arg1, %c0_i32, %c0_i32_0 : i32, i32, i32, i32
  }
}

</mosaic_0001>

<bundles_post_ra>
// kernel: darknet_block.1
= control target key start
LH: loop header
LB: loop body
LE: loop exit
PB: predicated region body
PF: predicated region fallthrough
CT: control target
= control target key end

     0   :  { %s4816_s24 = smov 0   ;;  %s4818_s25 = smov 0   ;;  %s6027_s0 = inlined_call_operand.vmem [shape: bf16[2,16,16,128], index: 0, kind: input, shape index: {}, may-alias: {0,1,2}]   ;;  %s6028_s1 = inlined_call_operand.vmem [shape: bf16[2,16,16,128], index: 1, kind: input, shape index: {}, may-alias: {0,1,2}]   ;;  %s6029_s2 = inlined_call_operand.vmem [shape: bf16[2,16,16,128], index: 2, kind: input, shape index: {}, may-alias: {0,1,2}]   ;;  %s6030_s3 = inlined_call_operand.vmem [shape: bf16[128,128], index: 3, kind: input, shape index: {}]   ;;  %s6031_s4 = inlined_call_operand.vmem [shape: f32[1,128], index: 4, kind: input, shape index: {}]   ;;  %s6032_s5 = inlined_call_operand.vmem [shape: bf16[3,3,128,128], index: 5, kind: input, shape index: {}]   ;;  %s6033_s6 = inlined_call_operand.vmem [shape: f32[1,128], index: 6, kind: input, shape index: {}]   ;;  %s6034_s7 = inlined_call_operand.vmem [shape: bf16[2,16,16,128], index: 7, kind: output, shape index: {}]  }
   0x1   :  { %s4820_s26 = smov 0   ;;  %s4822_s27 = smov 0  }
   0x2   :  { %s4824_s28 = smov 0  }
   0x3 LB: > { %s26_s29 = sadd.s32 1, %s4763_s26  ;;  %s29_s30 = sadd.s32 1, %s4767_s27  ;;  %s4771_s28 = sphi %s4824_s28, %s17_s28   ;;  %s4767_s27 = sphi %s4822_s27, %s6107_s27   ;;  %s4763_s26 = sphi %s4820_s26, %s6106_s26   ;;  %s4759_s25 = sphi %s4818_s25, %s6105_s25   ;;  %s4755_s24 = sphi %s4816_s24, %s6104_s24  }
   0x4   : > { %p27_p0 = scmp.ge.s32.totalorder %s26_s29, 2  ;;  %p3494_p1 = scmp.ge.s32.totalorder %s4771_s28, 1 }
   0x5   : > { %p323_p2 = scmp.lt.s32.totalorder %s4771_s28, 5 }
   0x6   : > { %s6109_s29 = smov (%p27_p0, %s26_s29), 0  ;;  %s6111_s30 = smov (!%p27_p0, %s29_s30), %s4767_s27 }
   0x7   : > { %p324_p3 = pnand %p3494_p1, %p323_p2  ;;  %p31_p4 = scmp.ge.s32.totalorder %s6111_s30, 2 }
   0x9   : > { %s6113_s30 = smov (%p31_p4, %s6111_s30), 0  ;;  %327 = sbr.rel (%p324_p3) target bundleno = 635 (0x27b), region = 48 }
   0xe   : > { %v4615_v0 = vld [vmem:[%s6030_s3 + $0x38] sm:$0xff]   ;;  %v4773_v1 = vmov 0.0   ;;  %v4617_v3 = vld [vmem:[%s6030_s3 + $0x30] sm:$0xff]   ;;  %vm4774_vm0 = vmmov 0   ;;  %s4865_s14 = sshll.u32 %s4755_s24, 3  ;;  %p392_p5 = scmp.lt.s32.totalorder %s4759_s25, 1  ;;  %v1133_v51 = vlaneseq }
   0xf   : > { %4244 = vmatprep.subr.bf16.mxu1 %v4773_v1  ;;  %v4857_v2 = vld [vmem:[%s6030_s3 + $0x38] sm:$0xff]   ;;  %4212 = vmatprep.subr.bf16.mxu0 %v4615_v0  ;;  %v4871_v4 = vld [vmem:[%s6030_s3 + $0x30] sm:$0xff]   ;;  %v4619_v5 = vld [vmem:[%s6030_s3 + $0x28] sm:$0xff]   ;;  %p394_p6 = scmp.lt.s32.totalorder %s4865_s14, 15  ;;  %s3500_s11 = sadd.s32 4294967295, %s4865_s14  ;;  %v4775_v37 = vmov 0  }
  0x10   : > { %4260 = vmatprep.mubr.msk.bf16.mxu1 %vm4774_vm0, %v4773_v1  ;;  %4245 = vmatpush3.bf16.msra.mxu1 %v4857_v2  ;;  %s6115_s25 = smov (!%p392_p5, %s4759_s25), 1  ;;  %v4885_v6 = vld [vmem:[%s6030_s3 + $0x28] sm:$0xff]   ;;  %v4621_v7 = vld [vmem:[%s6030_s3 + $0x20] sm:$0xff]   ;;  %p404_p7 = scmp.gt.s32.totalorder %s3500_s11, 0  ;;  %v4623_v9 = vld [vmem:[%s6030_s3 + $0x18] sm:$0xff]  }
  0x11   : > { %4213 = vmatpush3.bf16.msra.mxu0 %v4615_v0  ;;  %4246 = vmatprep.subr.bf16.mxu1 %v4773_v1  ;;  %s395_s19 = scalar_select %p394_p6, %s4865_s14, 15  ;;  %v4902_v8 = vld [vmem:[%s6030_s3 + $0x20] sm:$0xff]   ;;  %v4918_v10 = vld [vmem:[%s6030_s3 + $0x18] sm:$0xff]   ;;  %v4625_v11 = vld [vmem:[%s6030_s3 + $0x10] sm:$0xff]   ;;  %1003 = vst [vmem:[#allocation2 + $0x8] sm:$0xf] %v4775_v37 }
  0x12   : > { %4214 = vmatprep.subr.bf16.mxu0 %v4617_v3  ;;  %s4887_s22 = sshll.u32 %s6115_s25, 5  ;;  %p3501_p8 = scmp.lt.s32.totalorder %s3500_s11, 15  ;;  %v4626_v13 = vld [vmem:[%s6030_s3 + $0x10] sm:$0xff]   ;;  %v4627_v14 = vld [vmem:[%s6030_s3 + $0x8] sm:$0xff]   ;;  %v4629_v16 = vld [vmem:[%s6030_s3] sm:$0xff]  }
  0x13   : > { %s3496_s9 = sshll.u32 %s395_s19, 1  ;;  %s6117_s11 = smov (!%p404_p7, %s3500_s11), 0  ;;  %v4628_v15 = vld [vmem:[%s6030_s3 + $0x8] sm:$0xff]   ;;  %v4630_v17 = vld [vmem:[%s6030_s3] sm:$0xff]   ;;  %v4641_v18 = vld [vmem:[%s6032_s5 + $0x38] sm:$0xff]  }
  0x14   : > { %4247 = vmatpush3.bf16.msra.mxu1 %v4871_v4  ;;  %s4894_s10 = sadd.s32 %s4887_s22, %s3496_s9  ;;  %s3804_s23 = sadd.s32 8, %s4865_s14  ;;  %v4642_v28 = vld [vmem:[%s6032_s5 + $0xf8] sm:$0xff]   ;;  %v4643_v29 = vld [vmem:[%s6032_s5 + $0x30] sm:$0xff]   ;;  %v4645_v31 = vld [vmem:[%s6032_s5 + $0x28] sm:$0xff]   ;;  %1004 = vst [vmem:[#allocation2 + $0xc] sm:$0xf] %v4775_v37 }
  0x15   : > { %4215 = vmatpush3.bf16.msra.mxu0 %v4617_v3  ;;  %4248 = vmatprep.subr.bf16.mxu1 %v4773_v1  ;;  %s3498_s12 = sshll.u32 %s4894_s10, 2  ;;  %s6119_s11 = smov (!%p3501_p8, %s6117_s11), 15  ;;  %v4644_v30 = vld [vmem:[%s6032_s5 + $0xf0] sm:$0xff]   ;;  %v4646_v32 = vld [vmem:[%s6032_s5 + $0xe8] sm:$0xff]   ;;  %v4647_v33 = vld [vmem:[%s6032_s5 + $0x20] sm:$0xff]  }
  0x16   : > { %4216 = vmatprep.subr.bf16.mxu0 %v4619_v5  ;;  %s4913_s19 = scalar_lea.vmem %s6027_s0, %s3498_s12  ;;  %s3506_s25 = sshll.u32 %s6119_s11, 1  ;;  %v4648_v34 = vld [vmem:[%s6032_s5 + $0xe0] sm:$0xff]   ;;  %v4649_v35 = vld [vmem:[%s6032_s5 + $0x18] sm:$0xff]   ;;  %1005 = vst [vmem:[#allocation2 + $0x18] sm:$0xf] %v4775_v37  ;;  %v4651_v38 = vld [vmem:[%s6032_s5 + $0x10] sm:$0xff]  }
  0x17   : > { %v4631_v12 = vld [vmem:[%s4913_s19] sm:$0xff]   ;;  %p4927_p9 = scmp.lt.s32.totalorder %s3804_s23, 15  ;;  %s412_s14 = sadd.s32 %s3506_s25, %s4887_s22  ;;  %v4633_v19 = vld [vmem:[%s4913_s19 + $0x8] sm:$0xff]   ;;  %v4634_v21 = vld [vmem:[%s4913_s19 + $0x10] sm:$0xff]   ;;  %1006 = vst [vmem:[#allocation2 + $0x1c] sm:$0xf] %v4775_v37 }
  0x18   : > { %4249 = vmatpush3.bf16.msra.mxu1 %v4885_v6  ;;  %4228 = vmatprep.mubr.bf16.mxu0 %v4631_v12  ;;  %s3508_s17 = sshll.u32 %s412_s14, 2  ;;  %v4635_v22 = vld [vmem:[%s4913_s19 + $0x18] sm:$0xff]   ;;  %v4636_v23 = vld [vmem:[%s4913_s19 + $0x20] sm:$0xff]   ;;  %v4637_v24 = vld [vmem:[%s4913_s19 + $0x28] sm:$0xff]   ;;  %1007 = vst [vmem:[#allocation2 + $0x28] sm:$0xf] %v4775_v37 }
  0x19   : > { %4217 = vmatpush3.bf16.msra.mxu0 %v4619_v5  ;;  %4250 = vmatprep.subr.bf16.mxu1 %v4773_v1  ;;  %s414_s8 = scalar_lea.vmem %s6028_s1, %s3508_s17  ;;  %s6121_s23 = smov (!%p4927_p9, %s3804_s23), 15  ;;  %v4638_v25 = vld [vmem:[%s4913_s19 + $0x30] sm:$0xff]   ;;  %v4639_v26 = vld [vmem:[%s4913_s19 + $0x38] sm:$0xff]   ;;  %1008 = vst [vmem:[#allocation2 + $0x2c] sm:$0xf] %v4775_v37  ;;  %v4653_v40 = vld [vmem:[%s6032_s5 + $0x8] sm:$0xff]  }
  0x1a   : > { %4218 = vmatprep.subr.bf16.mxu0 %v4621_v7  ;;  %s6123_s23 = smov (!%p4927_p9, %s6121_s23), 15  ;;  %v4632_v20 = vld [vmem:[%s414_s8] sm:$0xff]   ;;  %v4650_v36 = vld [vmem:[%s6032_s5 + $0xd8] sm:$0xff]   ;;  %1009 = vst [vmem:[#allocation2 + $0x38] sm:$0xf] %v4775_v37  ;;  %v4652_v39 = vld [vmem:[%s6032_s5 + $0xd0] sm:$0xff]  }
  0x1b   : > { %s3513_s16 = sshll.u32 %s6123_s23, 1  ;;  %1010 = vst [vmem:[#allocation2 + $0x3c] sm:$0xf] %v4775_v37  ;;  %1011 = vst [vmem:[#allocation2 + $0x48] sm:$0xf] %v4775_v37  ;;  %v4654_v41 = vld [vmem:[%s6032_s5 + $0xc8] sm:$0xff]  }
  0x1c   : > { %4251 = vmatpush3.bf16.msra.mxu1 %v4902_v8  ;;  %s429_s18 = sadd.s32 %s3513_s16, %s4887_s22  ;;  %1012 = vst [vmem:[#allocation2 + $0x4c] sm:$0xf] %v4775_v37  ;;  %1013 = vst [vmem:[#allocation2 + $0x58] sm:$0xf] %v4775_v37  ;;  %v4655_v42 = vld [vmem:[%s6032_s5] sm:$0xff]   ;;  %v5043_v44 = vld [vmem:[%s6032_s5 + $0x1b8] sm:$0xff]   ;;  %s5964_s16 = scalar_lea.vmem %s6034_s7, %s3498_s12 }
  0x1d   : > { %4219 = vmatpush3.bf16.msra.mxu0 %v4621_v7  ;;  %4252 = vmatprep.subr.bf16.mxu1 %v4773_v1  ;;  %s4958_s20 = sshll.u32 %s429_s18, 2  ;;  %1014 = vst [vmem:[#allocation2 + $0x5c] sm:$0xf] %v4775_v37  ;;  %1015 = vst [vmem:[#allocation2 + $0x68] sm:$0xf] %v4775_v37  ;;  %v4656_v43 = vld [vmem:[%s6032_s5 + $0xc0] sm:$0xff]  }
  0x1e   : > { %4220 = vmatprep.subr.bf16.mxu0 %v4623_v9  ;;  %s431_s25 = scalar_lea.vmem %s6029_s2, %s4958_s20  ;;  %1016 = vst [vmem:[#allocation2 + $0x6c] sm:$0xf] %v4775_v37  ;;  %1017 = vst [vmem:[#allocation2 + $0x78] sm:$0xf] %v4775_v37  ;;  %v5049_v45 = vld [vmem:[%s6032_s5 + $0x78] sm:$0xff]   ;;  %p970_p10 = scmp.gt.s32.totalorder %s4755_s24, 0 }
  0x1f   : > { %v4640_v27 = vld [vmem:[%s431_s25] sm:$0xff]   ;;  %1018 = vst [vmem:[#allocation2 + $0x7c] sm:$0xf] %v4775_v37  ;;  %1019 = vst [vmem:[#allocation2 + $0x88] sm:$0xf] %v4775_v37  ;;  %v5058_v47 = vld [vmem:[#allocation2 + $0x8] sm:$0xff]  }
  0x20   : > { %4253 = vmatpush3.bf16.msra.mxu1 %v4918_v10  ;;  %1020 = vst [vmem:[#allocation2 + $0x8c] sm:$0xf] %v4775_v37  ;;  %1021 = vst [vmem:[#allocation2 + $0x98] sm:$0xf] %v4775_v37  ;;  %v5056_v46 = vld [vmem:[%s6031_s4] ss:$0 sm:$0xff]  ;;  %v3894_v57 = vunpack.c.h.bf16 %v5058_v47 }
  0x21   : > { %4221 = vmatpush3.bf16.msra.mxu0 %v4623_v9  ;;  %4254 = vmatprep.subr.bf16.mxu1 %v4773_v1  ;;  %1022 = vst [vmem:[#allocation2 + $0x9c] sm:$0xf] %v4775_v37  ;;  %s971_s21 = scalar_select %p970_p10, 1, 0  ;;  %v5061_v52 = vld [vmem:[#allocation2 + $0x28] sm:$0xff]   ;;  %v5066_v62 = vld [vmem:[#allocation2 + $0x18] sm:$0xff]  }
  0x22   : > { %4222 = vmatprep.subr.bf16.mxu0 %v4625_v11  ;;  %v3902_v63 = vunpack.c.h.bf16 %v5061_v52  ;;  %v5076_v3 = vld [vmem:[#allocation2 + $0x38] sm:$0xff]   ;;  %p986_p11 = scmp.lt.s32.totalorder %s4755_s24, 1 }
  0x23   : > { %v972_v53 = vstv %s971_s21 }
  0x24   : > { %4255 = vmatpush3.bf16.msra.mxu1 %v4626_v13  ;;  %vm5069_vm1 = vcmp.eq.s32.totalorder %v972_v53, 1  ;;  %v3897_v53 = vunpack.c.l.bf16 %v5066_v62  ;;  %s5124_s23 = scalar_select %p986_p11, 1, 0 }
  0x25   : > { %4223 = vmatpush3.bf16.msra.mxu0 %v4625_v11  ;;  %4256 = vmatprep.subr.bf16.mxu1 %v4773_v1 }
  0x26   : > { %4224 = vmatprep.subr.bf16.mxu0 %v4627_v14 }
  0x28   : > { %4257 = vmatpush3.bf16.msra.mxu1 %v4628_v15 }
  0x29   : > { %4225 = vmatpush3.bf16.msra.mxu0 %v4627_v14  ;;  %4258 = vmatprep.subr.bf16.mxu1 %v4773_v1  ;;  %v3898_v14 = vunpack.c.h.bf16 %v5066_v62 }
  0x2a   : > { %4226 = vmatprep.subr.bf16.mxu0 %v4629_v16 }
  0x2c   : > { %4259 = vmatpush3.bf16.msra.mxu1 %v4630_v17 }
  0x2d   : > { %4227 = vmatpush3.bf16.msra.mxu0 %v4629_v16  ;;  %4284 = vmatprep.subr.bf16.mxu1 %v4641_v18 }
  0x2e   : > { %4264 = vmatprep.subr.bf16.mxu0 %v4773_v1 }
  0x2f   : > { %4261 = vmatmul.mubr.bf16.vlgmr.msra.gmra.mxu1 %v4632_v20 }
  0x30   : > { %4229 = vmatmul.mubr.bf16.vlgmr.msra.gmra.mxu0 %v4633_v19  ;;  %4285 = vmatpush3.bf16.msra.mxu1 %v4641_v18  ;;  %v5087_v18 = vrot.slane %v3902_v63, 7  ;;  %v3906_v19 = vunpack.c.h.bf16 %v5076_v3 }
  0x31   : > { %4232 = vmatprep.mubr.bf16.mxu0 %v4634_v21  ;;  %4265 = vmatpush3.bf16.msra.mxu0 %v4857_v2  ;;  %v5074_v2 = vshrl.u32 %v1133_v51, 7 }
  0x32   : > { %4266 = vmatprep.subr.bf16.mxu0 %v4773_v1  ;;  %4286 = vmatprep.subr.bf16.mxu1 %v4643_v29 }
  0x33   : > { %vm1135_vm2 = vcmp.lt.s32.totalorder %v5074_v2, 1  ;;  %vm2483_vm4 = vcmp.lt.s32.totalorder %v5074_v2, 7  ;;  %v4696_v2 = vld [vmem:[%s6032_s5 + $0x1c0] sm:$0xff]  }
  0x34   : > { %4287 = vmatpush3.bf16.msra.mxu1 %v4643_v29 }
  0x35   : > { %4267 = vmatpush3.bf16.msra.mxu0 %v4871_v4  ;;  %4288 = vmatprep.subr.bf16.mxu1 %v4645_v31  ;;  %v5078_v4 = vld [vmem:[#allocation2 + $0x48] sm:$0xff]  }
  0x36   : > { %4268 = vmatprep.subr.bf16.mxu0 %v4773_v1  ;;  %v3910_v20 = vunpack.c.h.bf16 %v5078_v4  ;;  %v3909_v62 = vunpack.c.l.bf16 %v5078_v4  ;;  %v988_v4 = vstv %s5124_s23 }
  0x37   : > { %vm5203_vm3 = vcmp.eq.s32.totalorder %v988_v4, 1 }
  0x38   : > { %4233 = vmatmul.mubr.bf16.gmra.mxu0 %v4635_v22  ;;  %4289 = vmatpush3.bf16.msra.mxu1 %v4645_v31 }
  0x39   : > { %4236 = vmatprep.mubr.bf16.mxu0 %v4636_v23  ;;  %4269 = vmatpush3.bf16.msra.mxu0 %v4885_v6 }
  0x3a   : > { %4270 = vmatprep.subr.bf16.mxu0 %v4773_v1  ;;  %4290 = vmatprep.subr.bf16.mxu1 %v4647_v33 }
  0x3c   : > { %4291 = vmatpush3.bf16.msra.mxu1 %v4647_v33 }
  0x3d   : > { %4271 = vmatpush3.bf16.msra.mxu0 %v4902_v8  ;;  %4292 = vmatprep.subr.bf16.mxu1 %v4649_v35 }
  0x3e   : > { %4272 = vmatprep.subr.bf16.mxu0 %v4773_v1 }
  0x40   : > { %4237 = vmatmul.mubr.bf16.gmra.mxu0 %v4637_v24  ;;  %4293 = vmatpush3.bf16.msra.mxu1 %v4649_v35  ;;  %v3893_v24 = vunpack.c.l.bf16 %v5058_v47  ;;  %v5109_v47 = vld [vmem:[#allocation2 + $0x78] sm:$0xff]  }
  0x41   : > { %4240 = vmatprep.mubr.bf16.mxu0 %v4638_v25  ;;  %4273 = vmatpush3.bf16.msra.mxu0 %v4918_v10  ;;  %v5081_v10 = vrot.slane %v3894_v57, 7 }
  0x42   : > { %4274 = vmatprep.subr.bf16.mxu0 %v4773_v1  ;;  %4294 = vmatprep.subr.bf16.mxu1 %v4651_v38 }
  0x44   : > { %4295 = vmatpush3.bf16.msra.mxu1 %v4651_v38  ;;  %v5101_v38 = vrot.slane %v3898_v14, 7 }
  0x45   : > { %4275 = vmatpush3.bf16.msra.mxu0 %v4626_v13  ;;  %4296 = vmatprep.subr.bf16.mxu1 %v4653_v40 }
  0x46   : > { %4276 = vmatprep.subr.bf16.mxu0 %v4773_v1 }
  0x48   : > { %4241 = vmatmul.mubr.bf16.gmra.mxu0 %v4639_v26  ;;  %4297 = vmatpush3.bf16.msra.mxu1 %v4653_v40 }
  0x49   : > { %4277 = vmatpush3.bf16.msra.mxu0 %v4628_v15  ;;  %4280 = vmatprep.mubr.msk.bf16.mxu0 %vm4774_vm0, %v4773_v1  ;;  %v5085_v15 = vld [vmem:[#allocation2 + $0x68] sm:$0xff]  }
  0x4a   : > { %4278 = vmatprep.subr.bf16.mxu0 %v4773_v1  ;;  %4298 = vmatprep.subr.bf16.mxu1 %v4655_v42  ;;  %v3918_v29 = vunpack.c.h.bf16 %v5085_v15 }
  0x4c   : > { %4299 = vmatpush3.bf16.msra.mxu1 %v4655_v42  ;;  %v5118_v57 = vrot.slane %v3918_v29, 7 }
  0x4d   : > { %4279 = vmatpush3.bf16.msra.mxu0 %v4630_v17  ;;  %4348 = vmatprep.subr.bf16.mxu1 %v5043_v44 }
  0x4e   : > { %4316 = vmatprep.subr.bf16.mxu0 %v4642_v28 }
  0x50   : > { %4281 = vmatmul.mubr.bf16.vlgmr.msra.gmra.mxu0 %v4640_v27 }
  0x51   : > { %4317 = vmatpush3.bf16.msra.mxu0 %v4642_v28 }
  0x52   : > { %4318 = vmatprep.subr.bf16.mxu0 %v4644_v30 }
  0x55   : > { %4319 = vmatpush3.bf16.msra.mxu0 %v4644_v30 }
  0x56   : > { %4320 = vmatprep.subr.bf16.mxu0 %v4646_v32 }
  0x59   : > { %4321 = vmatpush3.bf16.msra.mxu0 %v4646_v32 }
  0x5a   : > { %4322 = vmatprep.subr.bf16.mxu0 %v4648_v34 }
  0x5d   : > { %4323 = vmatpush3.bf16.msra.mxu0 %v4648_v34  ;;  %v5099_v34 = vld [vmem:[#allocation2 + $0x58] sm:$0xff]  }
  0x5e   : > { %4324 = vmatprep.subr.bf16.mxu0 %v4650_v36  ;;  %v3914_v51 = vunpack.c.h.bf16 %v5099_v34 }
  0x61   : > { %4325 = vmatpush3.bf16.msra.mxu0 %v4650_v36 }
  0x62   : > { %4326 = vmatprep.subr.bf16.mxu0 %v4652_v39 }
  0x65   : > { %4327 = vmatpush3.bf16.msra.mxu0 %v4652_v39  ;;  %v5103_v39 = vrot.slane %v3910_v20, 7  ;;  %v5143_v20 = vrot.slane %v3909_v62, 1 }
  0x66   : > { %4328 = vmatprep.subr.bf16.mxu0 %v4654_v41 }
  0x69   : > { %4329 = vmatpush3.bf16.msra.mxu0 %v4654_v41 }
  0x6a   : > { %4330 = vmatprep.subr.bf16.mxu0 %v4656_v43 }
  0x6d   : > { %4331 = vmatpush3.bf16.msra.mxu0 %v4656_v43  ;;  %v5107_v43 = vrot.slane %v3906_v19, 7 }
  0x6e   : > { %4380 = vmatprep.subr.bf16.mxu0 %v5049_v45 }
  0xef   : > { %v906_v48 = vpop.f32.mrf.mxu1 }
  0xf0   : > { %v4230_v49 = vpop.f32.mrf.mxu0  ;;  %v907_v50 = vadd.f32 %v5056_v46, %v906_v48  ;;  %v5111_v48 = vld [vmem:[#allocation2 + $0x88] sm:$0xff]  }
  0xf1   : > { %v626_v54 = vadd.f32 %v4230_v49, %v5056_v46  ;;  %v4262_v55 = vpop.f32.mrf.mxu1 }
  0xf2   : > { %v617_v56 = vpop.f32.mrf.mxu0  ;;  %v913_v58 = vmul.f32 0.1, %v907_v50 }
  0xf3   : > { %v618_v59 = vadd.f32 %v5056_v46, %v617_v56  ;;  %v909_v60 = vpop.f32.mrf.mxu1  ;;  %v682_v6 = vmul.f32 0.1, %v626_v54 }
  0xf4   : > { %v4231_v61 = vpop.f32.mrf.mxu0  ;;  %v910_v1 = vadd.f32 %v5056_v46, %v909_v60  ;;  %v915_v5 = vmax.f32 %v907_v50, %v913_v58  ;;  %v5120_v58 = vrot.slane %v3893_v24, 1  ;;  %v3922_v60 = vunpack.c.h.bf16 %v5109_v47 }
  0xf5   : > { %v629_v7 = vadd.f32 %v4231_v61, %v5056_v46  ;;  %v4263_v8 = vpop.f32.mrf.mxu1  ;;  %v680_v11 = vmul.f32 0.1, %v618_v59  ;;  %v698_v26 = vmax.f32 %v626_v54, %v682_v6  ;;  %v3901_v54 = vunpack.c.l.bf16 %v5061_v52 }
  0xf6   : > { %v620_v9 = vpop.f32.mrf.mxu0  ;;  %v914_v12 = vmul.f32 0.1, %v910_v1  ;;  %v974_v25 = vsel %vm5069_vm1, %v915_v5, 0.0  ;;  %v3926_v61 = vunpack.c.h.bf16 %v5111_v48  ;;  %v3905_v52 = vunpack.c.l.bf16 %v5076_v3 }
  0xf7   : > { %v621_v13 = vadd.f32 %v5056_v46, %v620_v9  ;;  %v683_v16 = vmul.f32 0.1, %v629_v7  ;;  %v696_v30 = vmax.f32 %v618_v59, %v680_v11  ;;  %v5131_v8 = vrot.slane %v3914_v51, 7 }
  0xf8   : > { %v4234_v17 = vpop.f32.mrf.mxu0  ;;  %v916_v21 = vmax.f32 %v910_v1, %v914_v12  ;;  %v5133_v9 = vrot.slane %v3897_v53, 1  ;;  %v5135_v11 = vrot.slane %v3901_v54, 1  ;;  %v5141_v19 = vrot.slane %v3926_v61, 7 }
  0xf9   : > { %v681_v22 = vmul.f32 0.1, %v621_v13  ;;  %v642_v23 = vadd.f32 %v4234_v17, %v5056_v46  ;;  %v699_v27 = vmax.f32 %v629_v7, %v683_v16  ;;  %v5139_v17 = vrot.slane %v3922_v60, 7 }
  0xfa   : > { %v633_v28 = vpop.f32.mrf.mxu0  ;;  %v975_v31 = vsel %vm5069_vm1, %v916_v21, 0.0 }
  0xfb   : > { %v697_v32 = vmax.f32 %v621_v13, %v681_v22  ;;  %v634_v33 = vadd.f32 %v5056_v46, %v633_v28  ;;  %v3884_v35 = vpack.c.bf16 %v975_v31, %v974_v25  ;;  %v3849_v36 = vpack.c.bf16 %v699_v27, %v698_v26 }
  0xfc   : > { %v4235_v37 = vpop.f32.mrf.mxu0  ;;  %v686_v41 = vmul.f32 0.1, %v642_v23  ;;  %v5150_v26 = vrot.slane %v3905_v52, 1 }
  0xfd   : > { %v3844_v40 = vpack.c.bf16 %v697_v32, %v696_v30  ;;  %v645_v42 = vadd.f32 %v4235_v37, %v5056_v46  ;;  %3885 = vst [vmem:[#allocation2] sm:$0xff] %v3884_v35   ;;  %4003 = vst [vmem:[#allocation2 + $0x20] sm:$0xff] %v3849_v36   ;;  %v684_v49 = vmul.f32 0.1, %v634_v33 }
  0xfe   : > { %v636_v50 = vpop.f32.mrf.mxu0  ;;  %v702_v63 = vmax.f32 %v642_v23, %v686_v41 }
  0xff   : > { %3845 = vst [vmem:[#allocation2 + $0x10] sm:$0xff] %v3844_v40   ;;  %v687_v55 = vmul.f32 0.1, %v645_v42  ;;  %v637_v56 = vadd.f32 %v5056_v46, %v636_v50  ;;  %v700_v6 = vmax.f32 %v634_v33, %v684_v49 }
 0x100   : > { %v4238_v59 = vpop.f32.mrf.mxu0 }
 0x101   : > { %v703_v0 = vmax.f32 %v645_v42, %v687_v55  ;;  %v685_v1 = vmul.f32 0.1, %v637_v56  ;;  %v658_v5 = vadd.f32 %v4238_v59, %v5056_v46 }
 0x102   : > { %v649_v7 = vpop.f32.mrf.mxu0 }
 0x103   : > { %v3859_v12 = vpack.c.bf16 %v703_v0, %v702_v63  ;;  %v701_v13 = vmax.f32 %v637_v56, %v685_v1  ;;  %v690_v14 = vmul.f32 0.1, %v658_v5  ;;  %v650_v3 = vadd.f32 %v5056_v46, %v649_v7 }
 0x104   : > { %v4239_v16 = vpop.f32.mrf.mxu0  ;;  %v5146_v24 = vld [vmem:[#allocation2] sm:$0xff]  }
 0x105   : > { %4005 = vst [vmem:[#allocation2 + $0x40] sm:$0xff] %v3859_v12   ;;  %v3854_v21 = vpack.c.bf16 %v701_v13, %v700_v6  ;;  %v706_v22 = vmax.f32 %v658_v5, %v690_v14  ;;  %v661_v23 = vadd.f32 %v4239_v16, %v5056_v46  ;;  %v5148_v25 = vld [vmem:[#allocation2 + $0x20] sm:$0xff]   ;;  %v1063_v28 = vunpack.c.l.bf16 %v5146_v24 }
 0x106   : > { %v652_v27 = vpop.f32.mrf.mxu0  ;;  %v1064_v29 = vunpack.c.h.bf16 %v5146_v24  ;;  %v5154_v30 = vld [vmem:[#allocation2 + $0x10] sm:$0xff]   ;;  %v1071_v31 = vunpack.c.l.bf16 %v5148_v25  ;;  %v1072_v32 = vunpack.c.h.bf16 %v5148_v25  ;;  %v688_v33 = vmul.f32 0.1, %v650_v3 }
 0x107   : > { %4004 = vst [vmem:[#allocation2 + $0x30] sm:$0xff] %v3854_v21   ;;  %v691_v35 = vmul.f32 0.1, %v661_v23  ;;  %v653_v36 = vadd.f32 %v5056_v46, %v652_v27  ;;  %v1067_v37 = vunpack.c.l.bf16 %v5154_v30  ;;  %v1103_v41 = vrot.slane %v1063_v28, 7 }
 0x108   : > { %v4242_v40 = vpop.f32.mrf.mxu0  ;;  %v1113_v42 = vrot.slane %v1064_v29, 7  ;;  %v1068_v49 = vunpack.c.h.bf16 %v5154_v30  ;;  %v1105_v50 = vrot.slane %v1071_v31, 7  ;;  %v1115_v52 = vrot.slane %v1072_v32, 7 }
 0x109   : > { %v707_v51 = vmax.f32 %v661_v23, %v691_v35  ;;  %v689_v53 = vmul.f32 0.1, %v653_v36  ;;  %v674_v54 = vadd.f32 %v4242_v40, %v5056_v46  ;;  %v1104_v55 = vrot.slane %v1067_v37, 7 }
 0x10a   : > { %v665_v56 = vpop.f32.mrf.mxu0  ;;  %v1136_v59 = vsel %vm1135_vm2, %v1103_v41, %v1113_v42  ;;  %v1146_v60 = vsel %vm1135_vm2, %v5081_v10, %v1103_v41  ;;  %v1114_v61 = vrot.slane %v1068_v49, 7  ;;  %v704_v62 = vmax.f32 %v650_v3, %v688_v33 }
 0x10b   : > { %v3869_v63 = vpack.c.bf16 %v707_v51, %v706_v22  ;;  %v705_v0 = vmax.f32 %v653_v36, %v689_v53  ;;  %v5180_v1 = vadd.f32 %v5056_v46, %v665_v56  ;;  %v1156_v6 = vpack.c.bf16 %v1136_v59, %v1146_v60 }
 0x10c   : > { %v4243_v5 = vpop.f32.mrf.mxu0  ;;  %v1137_v7 = vsel %vm1135_vm2, %v1104_v55, %v1114_v61  ;;  %v1147_v10 = vsel %vm1135_vm2, %v5101_v38, %v1104_v55  ;;  %v1138_v12 = vsel %vm1135_vm2, %v1105_v50, %v1115_v52  ;;  %v5189_v13 = vld [vmem:[#allocation2 + $0x40] sm:$0xff]   ;;  %v694_v3 = vmul.f32 0.1, %v674_v54  ;;  %v4659_v38 = vld [vmem:[%s6032_s5 + $0x1b0] sm:$0xff]  }
 0x10d   : > { %4007 = vst [vmem:[#allocation2 + $0x60] sm:$0xff] %v3869_v63   ;;  %v3864_v14 = vpack.c.bf16 %v705_v0, %v704_v62  ;;  %v692_v16 = vmul.f32 0.1, %v5180_v1  ;;  %v677_v21 = vadd.f32 %v4243_v5, %v5056_v46  ;;  %4300 = vmatprep.mubr.bf16.mxu1 %v1156_v6  ;;  %v1157_v23 = vpack.c.bf16 %v1137_v7, %v1147_v10  ;;  %v4661_v63 = vld [vmem:[%s6032_s5 + $0x1a8] sm:$0xff]  }
 0x10e   : > { %v668_v22 = vpop.f32.mrf.mxu0  ;;  %v1148_v27 = vsel %vm1135_vm2, %v5087_v18, %v1105_v50  ;;  %v5199_v33 = vld [vmem:[#allocation2 + $0x30] sm:$0xff]   ;;  %v1079_v35 = vunpack.c.l.bf16 %v5189_v13  ;;  %v1080_v36 = vunpack.c.h.bf16 %v5189_v13  ;;  %v3917_v18 = vunpack.c.l.bf16 %v5085_v15 }
 0x10f   : > { %4006 = vst [vmem:[#allocation2 + $0x50] sm:$0xff] %v3864_v14   ;;  %v695_v41 = vmul.f32 0.1, %v677_v21  ;;  %v669_v42 = vadd.f32 %v5056_v46, %v668_v22  ;;  %v5208_v51 = vpack.c.bf16 %v1138_v12, %v1148_v27  ;;  %4301 = vmatmul.mubr.bf16.vlgmr.msra.gmra.mxu1 %v1157_v23  ;;  %4332 = vmatprep.mubr.bf16.mxu0 %v1157_v23  ;;  %v4660_v50 = vld [vmem:[%s6032_s5 + $0x70] sm:$0xff]   ;;  %v1075_v53 = vunpack.c.l.bf16 %v5199_v33 }
 0x110   : > { %v1076_v4 = vunpack.c.h.bf16 %v5199_v33  ;;  %v1107_v55 = vrot.slane %v1079_v35, 7  ;;  %v1117_v56 = vrot.slane %v1080_v36, 7  ;;  %v959_v59 = vpop.f32.mrf.mxu0  ;;  %v710_v60 = vmax.f32 %v674_v54, %v694_v3  ;;  %4349 = vmatpush3.bf16.msra.mxu1 %v5043_v44  ;;  %v4662_v3 = vld [vmem:[%s6032_s5 + $0x68] sm:$0xff]  }
 0x111   : > { %v711_v61 = vmax.f32 %v677_v21, %v695_v41  ;;  %v693_v15 = vmul.f32 0.1, %v669_v42  ;;  %4304 = vmatprep.mubr.bf16.mxu1 %v5208_v51  ;;  %v960_v52 = vadd.f32 %v5056_v46, %v959_v59  ;;  %v708_v62 = vmax.f32 %v5180_v1, %v692_v16  ;;  %4333 = vmatmul.mubr.bf16.vlgmr.msra.gmra.mxu0 %v5208_v51 }
 0x112   : > { %4350 = vmatprep.subr.bf16.mxu1 %v4659_v38  ;;  %v1106_v54 = vrot.slane %v1075_v53, 7  ;;  %v1116_v44 = vrot.slane %v1076_v4, 7  ;;  %v1140_v0 = vsel %vm1135_vm2, %v1107_v55, %v1117_v56  ;;  %v4282_v5 = vpop.f32.mrf.mxu0  ;;  %4381 = vmatpush3.bf16.msra.mxu0 %v5049_v45  ;;  %v1150_v1 = vsel %vm1135_vm2, %v5103_v39, %v1107_v55 }
 0x113   : > { %v3879_v6 = vpack.c.bf16 %v711_v61, %v710_v60  ;;  %v709_v7 = vmax.f32 %v669_v42, %v693_v15  ;;  %v966_v10 = vmul.f32 0.1, %v960_v52  ;;  %4382 = vmatprep.subr.bf16.mxu0 %v4660_v50  ;;  %v3913_v21 = vunpack.c.l.bf16 %v5099_v34  ;;  %v4663_v42 = vld [vmem:[%s6032_s5 + $0x1a0] sm:$0xff]  }
 0x114   : > { %v1139_v12 = vsel %vm1135_vm2, %v1106_v54, %v1116_v44  ;;  %v1149_v14 = vsel %vm1135_vm2, %v5107_v43, %v1106_v54  ;;  %v5247_v16 = vld [vmem:[#allocation2 + $0x60] sm:$0xff]   ;;  %v962_v45 = vpop.f32.mrf.mxu0  ;;  %v3925_v39 = vunpack.c.l.bf16 %v5111_v48  ;;  %4351 = vmatpush3.bf16.msra.mxu1 %v4659_v38  ;;  %v5255_v41 = vpack.c.bf16 %v1140_v0, %v1150_v1 }
 0x115   : > { %4009 = vst [vmem:[#allocation2 + $0x80] sm:$0xff] %v3879_v6   ;;  %v3874_v22 = vpack.c.bf16 %v709_v7, %v708_v62  ;;  %v5251_v23 = vpack.c.bf16 %v1139_v12, %v1149_v14  ;;  %v1087_v27 = vunpack.c.l.bf16 %v5247_v16  ;;  %v1088_v43 = vunpack.c.h.bf16 %v5247_v16  ;;  %4352 = vmatprep.subr.bf16.mxu1 %v4661_v63 }
 0x116   : > { %v5260_v55 = vld [vmem:[#allocation2 + $0x50] sm:$0xff]   ;;  %v968_v34 = vmax.f32 %v960_v52, %v966_v10  ;;  %v963_v48 = vadd.f32 %v5056_v46, %v962_v45  ;;  %v4283_v56 = vpop.f32.mrf.mxu0  ;;  %v5263_v38 = vrot.slane %v3917_v18, 1  ;;  %4383 = vmatpush3.bf16.msra.mxu0 %v4660_v50  ;;  %v4664_v46 = vld [vmem:[%s6032_s5 + $0x60] sm:$0xff]   ;;  %v5276_v50 = vrot.slane %v3913_v21, 1 }
 0x117   : > { %4008 = vst [vmem:[#allocation2 + $0x70] sm:$0xff] %v3874_v22   ;;  %4336 = vmatprep.mubr.bf16.mxu0 %v5251_v23  ;;  %v1083_v59 = vunpack.c.l.bf16 %v5260_v55  ;;  %v1084_v60 = vunpack.c.h.bf16 %v5260_v55  ;;  %v1109_v61 = vrot.slane %v1087_v27, 7  ;;  %v1119_v15 = vrot.slane %v1088_v43, 7  ;;  %4305 = vmatmul.mubr.bf16.gmra.mxu1 %v5251_v23 }
 0x118   : > { %4384 = vmatprep.subr.bf16.mxu0 %v4662_v3  ;;  %v967_v18 = vmul.f32 0.1, %v963_v48  ;;  %v3921_v52 = vunpack.c.l.bf16 %v5109_v47  ;;  %v5279_v62 = vrot.slane %v3925_v39, 1  ;;  %4353 = vmatpush3.bf16.msra.mxu1 %v4661_v63  ;;  %v990_v5 = vsel %vm5203_vm3, %v968_v34, 0.0  ;;  %v4665_v47 = vld [vmem:[%s6032_s5 + $0x198] sm:$0xff]  }
 0x119   : > { %4308 = vmatprep.mubr.bf16.mxu1 %v5255_v41  ;;  %v1108_v54 = vrot.slane %v1083_v59, 7  ;;  %v1118_v44 = vrot.slane %v1084_v60, 7  ;;  %v1142_v0 = vsel %vm1135_vm2, %v1109_v61, %v1119_v15  ;;  %4337 = vmatmul.mubr.bf16.gmra.mxu0 %v5255_v41  ;;  %v1152_v63 = vsel %vm1135_vm2, %v5118_v57, %v1109_v61  ;;  %v5338_v34 = vld [vmem:[#allocation2 + $0x98] sm:$0xff]  }
 0x11a   : > { %4354 = vmatprep.subr.bf16.mxu1 %v4663_v42  ;;  %v969_v6 = vmax.f32 %v963_v48, %v967_v18  ;;  %v2453_v7 = vrot.slane %v1063_v28, 1  ;;  %v2463_v1 = vrot.slane %v1064_v29, 1  ;;  %4385 = vmatpush3.bf16.msra.mxu0 %v4662_v3  ;;  %v2454_v14 = vrot.slane %v1067_v37, 1  ;;  %v4666_v28 = vld [vmem:[%s6032_s5 + $0x58] sm:$0xff]  }
 0x11b   : > { %v1141_v10 = vsel %vm1135_vm2, %v1108_v54, %v1118_v44  ;;  %v1151_v12 = vsel %vm1135_vm2, %v5131_v8, %v1108_v54  ;;  %v2464_v57 = vrot.slane %v1068_v49, 1  ;;  %4386 = vmatprep.subr.bf16.mxu0 %v4664_v46  ;;  %v5328_v49 = vpack.c.bf16 %v1142_v0, %v1152_v63 }
 0x11c   : > { %v5310_v45 = vpack.c.bf16 %v1141_v10, %v1151_v12  ;;  %v991_v29 = vsel %vm5203_vm3, %v969_v6, 0.0  ;;  %v5317_v3 = vld [vmem:[#allocation2 + $0x80] sm:$0xff]   ;;  %v5322_v8 = vsel %vm2483_vm4, %v2463_v1, %v5120_v58  ;;  %v5326_v37 = vsel %vm2483_vm4, %v2453_v7, %v2463_v1  ;;  %4355 = vmatpush3.bf16.msra.mxu1 %v4663_v42  ;;  %v4667_v58 = vld [vmem:[%s6032_s5 + $0x190] sm:$0xff]  }
 0x11d   : > { %v3889_v21 = vpack.c.bf16 %v991_v29, %v990_v5  ;;  %v1095_v39 = vunpack.c.l.bf16 %v5317_v3  ;;  %v1096_v40 = vunpack.c.h.bf16 %v5317_v3  ;;  %4356 = vmatprep.subr.bf16.mxu1 %v4665_v47  ;;  %v2504_v42 = vpack.c.bf16 %v5322_v8, %v5326_v37  ;;  %v4717_v8 = vld [vmem:[%s6032_s5 + $0x228] sm:$0xff]   ;;  %v4718_v37 = vld [vmem:[%s6032_s5 + $0x220] sm:$0xff]  }
 0x11e   : > { %4340 = vmatprep.mubr.bf16.mxu0 %v5310_v45  ;;  %v5336_v22 = vld [vmem:[#allocation2 + $0x70] sm:$0xff]   ;;  %v2485_v48 = vsel %vm2483_vm4, %v2464_v57, %v5133_v9  ;;  %v2495_v56 = vsel %vm2483_vm4, %v2454_v14, %v2464_v57  ;;  %v2455_v61 = vrot.slane %v1071_v31, 1  ;;  %4387 = vmatpush3.bf16.msra.mxu0 %v4664_v46  ;;  %v2465_v46 = vrot.slane %v1072_v32, 1  ;;  %v4669_v32 = vld [vmem:[%s6032_s5 + $0x188] sm:$0xff]  }
 0x11f   : > { %v1091_v15 = vunpack.c.l.bf16 %v5336_v22  ;;  %v1092_v18 = vunpack.c.h.bf16 %v5336_v22  ;;  %3890 = vst [vmem:[#allocation2 + $0x90] sm:$0xff] %v3889_v21   ;;  %v1111_v54 = vrot.slane %v1095_v39, 7  ;;  %v1121_v44 = vrot.slane %v1096_v40, 7  ;;  %4309 = vmatmul.mubr.bf16.gmra.mxu1 %v5310_v45  ;;  %4388 = vmatprep.subr.bf16.mxu0 %v4666_v28  ;;  %v4668_v9 = vld [vmem:[%s6032_s5 + $0x50] sm:$0xff]  }
 0x120   : > { %v5359_v31 = vpack.c.bf16 %v2485_v48, %v2495_v56  ;;  %v2456_v0 = vrot.slane %v1075_v53, 1  ;;  %v2480_v5 = vrot.slane %v3921_v52, 1  ;;  %4357 = vmatpush3.bf16.msra.mxu1 %v4665_v47  ;;  %4312 = vmatprep.mubr.bf16.mxu1 %v5328_v49  ;;  %v3929_v1 = vunpack.c.l.bf16 %v5338_v34 }
 0x121   : > { %v1110_v63 = vrot.slane %v1091_v15, 7  ;;  %v1120_v6 = vrot.slane %v1092_v18, 7  ;;  %v1144_v7 = vsel %vm1135_vm2, %v1111_v54, %v1121_v44  ;;  %4341 = vmatmul.mubr.bf16.gmra.mxu0 %v5328_v49  ;;  %4358 = vmatprep.subr.bf16.mxu1 %v4667_v58  ;;  %v1154_v53 = vsel %vm1135_vm2, %v5141_v19, %v1111_v54 }
 0x122   : > { %v2486_v52 = vsel %vm2483_vm4, %v2465_v46, %v5135_v11  ;;  %v2496_v47 = vsel %vm2483_vm4, %v2455_v61, %v2465_v46  ;;  %v2466_v10 = vrot.slane %v1076_v4, 1  ;;  %4389 = vmatpush3.bf16.msra.mxu0 %v4666_v28  ;;  %v2457_v19 = vrot.slane %v1079_v35, 1  ;;  %v4670_v4 = vld [vmem:[%s6032_s5 + $0x48] sm:$0xff]  }
 0x123   : > { %v1143_v12 = vsel %vm1135_vm2, %v1110_v63, %v1120_v6  ;;  %v1153_v14 = vsel %vm1135_vm2, %v5139_v17, %v1110_v63  ;;  %v5388_v57 = vpack.c.bf16 %v2486_v52, %v2496_v47  ;;  %4390 = vmatprep.subr.bf16.mxu0 %v4668_v9  ;;  %v2467_v17 = vrot.slane %v1080_v36, 1  ;;  %v4676_v52 = vld [vmem:[%s6032_s5 + $0x1f8] sm:$0xff]  }
 0x124   : > { %v5392_v11 = vpack.c.bf16 %v1143_v12, %v1153_v14  ;;  %v2487_v28 = vsel %vm2483_vm4, %v2466_v10, %v5150_v26  ;;  %v2497_v29 = vsel %vm2483_vm4, %v2456_v0, %v2466_v10  ;;  %4359 = vmatpush3.bf16.msra.mxu1 %v4667_v58  ;;  %v2458_v35 = vrot.slane %v1083_v59, 1  ;;  %v4672_v26 = vld [vmem:[%s6032_s5 + $0x180] sm:$0xff]  }
 0x125   : > { %v5404_v21 = vpack.c.bf16 %v2487_v28, %v2497_v29  ;;  %v2468_v48 = vrot.slane %v1084_v60, 1  ;;  %v2459_v56 = vrot.slane %v1087_v27, 1  ;;  %4360 = vmatprep.subr.bf16.mxu1 %v4669_v32  ;;  %v2488_v58 = vsel %vm2483_vm4, %v2467_v17, %v5143_v20  ;;  %v4673_v20 = vld [vmem:[%s6032_s5 + $0x40] sm:$0xff]   ;;  %v4686_v29 = vld [vmem:[%s6032_s5 + $0x118] sm:$0xff]  }
 0x126   : > { %4344 = vmatprep.mubr.bf16.mxu0 %v5392_v11  ;;  %v5416_v36 = vld [vmem:[#allocation2 + $0x90] sm:$0xff]   ;;  %v2498_v59 = vsel %vm2483_vm4, %v2457_v19, %v2467_v17  ;;  %v2469_v60 = vrot.slane %v1088_v43, 1  ;;  %v2460_v27 = vrot.slane %v1091_v15, 1  ;;  %4391 = vmatpush3.bf16.msra.mxu0 %v4668_v9  ;;  %v5425_v61 = vpack.c.bf16 %v1144_v7, %v1154_v53  ;;  %v4685_v28 = vld [vmem:[%s6032_s5 + $0x1e0] sm:$0xff]   ;;  %v4688_v17 = vld [vmem:[%s6032_s5 + $0x1d8] sm:$0xff]  }
 0x127   : > { %v1099_v54 = vunpack.c.l.bf16 %v5416_v36  ;;  %v1100_v44 = vunpack.c.h.bf16 %v5416_v36  ;;  %v5429_v46 = vpack.c.bf16 %v2488_v58, %v2498_v59  ;;  %4313 = vmatmul.mubr.bf16.gmra.mxu1 %v5392_v11  ;;  %4392 = vmatprep.subr.bf16.mxu0 %v4670_v4  ;;  %v2489_v43 = vsel %vm2483_vm4, %v2468_v48, %v5276_v50  ;;  %v4674_v50 = vld [vmem:[%s6032_s5 + $0x138] sm:$0xff]   ;;  %v4679_v19 = vld [vmem:[%s6032_s5 + $0x1f0] sm:$0xff]   ;;  %v4694_v59 = vld [vmem:[%s6032_s5 + $0x1c8] sm:$0xff]  }
 0x128   : > { %v2499_v15 = vsel %vm2483_vm4, %v2458_v35, %v2468_v48  ;;  %v2490_v9 = vsel %vm2483_vm4, %v2469_v60, %v5263_v38  ;;  %v2470_v0 = vrot.slane %v1092_v18, 1  ;;  %4361 = vmatpush3.bf16.msra.mxu1 %v4669_v32  ;;  %4364 = vmatprep.mubr.bf16.mxu1 %v5208_v51  ;;  %v2500_v6 = vsel %vm2483_vm4, %v2459_v56, %v2469_v60 }
 0x129   : > { %v5444_v63 = vpack.c.bf16 %v2489_v43, %v2499_v15  ;;  %v2482_v7 = vrot.slane %v3929_v1, 1  ;;  %4345 = vmatmul.mubr.bf16.gmra.mxu0 %v5425_v61  ;;  %4362 = vmatprep.subr.bf16.mxu1 %v4672_v26  ;;  %v5452_v53 = vpack.c.bf16 %v2490_v9, %v2500_v6  ;;  %v2461_v18 = vrot.slane %v1095_v39, 1  ;;  %v4703_v43 = vld [vmem:[%s6032_s5 + $0xa0] sm:$0xff]   ;;  %v4705_v15 = vld [vmem:[%s6032_s5 + $0x98] sm:$0xff]   ;;  %v4708_v9 = vld [vmem:[%s6032_s5 + $0x90] sm:$0xff]  }
 0x12a   : > { %v2491_v38 = vsel %vm2483_vm4, %v2470_v0, %v2480_v5  ;;  %v2501_v51 = vsel %vm2483_vm4, %v2460_v27, %v2470_v0  ;;  %4393 = vmatpush3.bf16.msra.mxu0 %v4670_v4  ;;  %4396 = vmatprep.mubr.bf16.mxu0 %v5146_v24  ;;  %v2471_v32 = vrot.slane %v1096_v40, 1  ;;  %v2462_v5 = vrot.slane %v1099_v54, 1  ;;  %v4678_v40 = vld [vmem:[%s6032_s5 + $0x130] sm:$0xff]   ;;  %v4680_v4 = vld [vmem:[%s6032_s5 + $0x128] sm:$0xff]   ;;  %v4695_v27 = vld [vmem:[%s6032_s5 + $0x100] sm:$0xff]  }
 0x12b   : > { %v5461_v1 = vpack.c.bf16 %v2491_v38, %v2501_v51  ;;  %4394 = vmatprep.subr.bf16.mxu0 %v4673_v20  ;;  %v2472_v47 = vrot.slane %v1100_v44, 1  ;;  %v1112_v35 = vrot.slane %v1099_v54, 7  ;;  %v1122_v48 = vrot.slane %v1100_v44, 7  ;;  %v4698_v54 = vld [vmem:[%s6032_s5 + $0x178] sm:$0xff]   ;;  %v4700_v44 = vld [vmem:[%s6032_s5 + $0x170] sm:$0xff]   ;;  %v4710_v0 = vld [vmem:[%s6032_s5 + $0x88] sm:$0xff]  }
 0x12c   : > { %4363 = vmatpush3.bf16.msra.mxu1 %v4672_v26  ;;  %v2492_v24 = vsel %vm2483_vm4, %v2471_v32, %v5279_v62  ;;  %v2502_v39 = vsel %vm2483_vm4, %v2461_v18, %v2471_v32  ;;  %v4692_v26 = vld [vmem:[%s6032_s5 + $0x108] sm:$0xff]   ;;  %v4713_v6 = vld [vmem:[%s6032_s5 + $0x80] sm:$0xff]  }
 0x12d   : > { %4412 = vmatprep.subr.bf16.mxu1 %v4674_v50  ;;  %v5480_v10 = vpack.c.bf16 %v2492_v24, %v2502_v39  ;;  %v5484_v12 = vsel %vm2483_vm4, %v2472_v47, %v2482_v7  ;;  %v5488_v14 = vsel %vm2483_vm4, %v2462_v5, %v2472_v47  ;;  %v4715_v7 = vld [vmem:[%s6032_s5 + $0x238] sm:$0xff]  }
 0x12e   : > { %4395 = vmatpush3.bf16.msra.mxu0 %v4673_v20  ;;  %v2513_v62 = vpack.c.bf16 %v5484_v12, %v5488_v14  ;;  %v4701_v20 = vld [vmem:[%s6032_s5 + $0xa8] sm:$0xff]  }
 0x12f   : > { %4365 = vmatmul.mubr.bf16.vlgmr.msra.gmra.mxu1 %v5251_v23  ;;  %4444 = vmatprep.subr.bf16.mxu0 %v4676_v52  ;;  %v4682_v23 = vld [vmem:[%s6032_s5 + $0x1e8] sm:$0xff]  }
 0x130   : > { %4413 = vmatpush3.bf16.msra.mxu1 %v4674_v50  ;;  %4368 = vmatprep.mubr.bf16.mxu1 %v5255_v41  ;;  %v4684_v41 = vld [vmem:[%s6032_s5 + $0x120] sm:$0xff]  }
 0x131   : > { %4397 = vmatmul.mubr.bf16.vlgmr.msra.gmra.mxu0 %v5154_v30  ;;  %4414 = vmatprep.subr.bf16.mxu1 %v4678_v40  ;;  %v4722_v50 = vld [vmem:[%s6032_s5 + $0x200] sm:$0xff]  }
 0x132   : > { %4400 = vmatprep.mubr.bf16.mxu0 %v5148_v25  ;;  %4445 = vmatpush3.bf16.msra.mxu0 %v4676_v52 }
 0x133   : > { %4446 = vmatprep.subr.bf16.mxu0 %v4679_v19 }
 0x134   : > { %4415 = vmatpush3.bf16.msra.mxu1 %v4678_v40 }
 0x135   : > { %4416 = vmatprep.subr.bf16.mxu1 %v4680_v4 }
 0x136   : > { %4447 = vmatpush3.bf16.msra.mxu0 %v4679_v19 }
 0x137   : > { %4369 = vmatmul.mubr.bf16.gmra.mxu1 %v5310_v45  ;;  %4448 = vmatprep.subr.bf16.mxu0 %v4682_v23  ;;  %v3930_v45 = vunpack.c.h.bf16 %v5338_v34  ;;  %v4691_v34 = vld [vmem:[%s6032_s5 + $0x1d0] sm:$0xff]  }
 0x138   : > { %4417 = vmatpush3.bf16.msra.mxu1 %v4680_v4  ;;  %4372 = vmatprep.mubr.bf16.mxu1 %v5328_v49  ;;  %v4690_v49 = vld [vmem:[%s6032_s5 + $0x110] sm:$0xff]  }
 0x139   : > { %4401 = vmatmul.mubr.bf16.gmra.mxu0 %v5199_v33  ;;  %4418 = vmatprep.subr.bf16.mxu1 %v4684_v41  ;;  %v1132_v56 = vrot.slane %v3930_v45, 7 }
 0x13a   : > { %4404 = vmatprep.mubr.bf16.mxu0 %v5189_v13  ;;  %4449 = vmatpush3.bf16.msra.mxu0 %v4682_v23 }
 0x13b   : > { %4450 = vmatprep.subr.bf16.mxu0 %v4685_v28  ;;  %v1155_v58 = vsel %vm1135_vm2, %v1132_v56, %v1112_v35 }
 0x13c   : > { %4419 = vmatpush3.bf16.msra.mxu1 %v4684_v41 }
 0x13d   : > { %4420 = vmatprep.subr.bf16.mxu1 %v4686_v29 }
 0x13e   : > { %4451 = vmatpush3.bf16.msra.mxu0 %v4685_v28 }
 0x13f   : > { %4373 = vmatmul.mubr.bf16.gmra.mxu1 %v5392_v11  ;;  %4452 = vmatprep.subr.bf16.mxu0 %v4688_v17  ;;  %v1145_v11 = vsel %vm1135_vm2, %v1112_v35, %v1122_v48 }
 0x140   : > { %4421 = vmatpush3.bf16.msra.mxu1 %v4686_v29  ;;  %4376 = vmatprep.mubr.bf16.mxu1 %v5425_v61  ;;  %v1165_v60 = vpack.c.bf16 %v1145_v11, %v1155_v58  ;;  %v4697_v61 = vld [vmem:[%s6032_s5 + $0xb8] sm:$0xff]  }
 0x141   : > { %4405 = vmatmul.mubr.bf16.gmra.mxu0 %v5260_v55  ;;  %4422 = vmatprep.subr.bf16.mxu1 %v4690_v49 }
 0x142   : > { %4408 = vmatprep.mubr.bf16.mxu0 %v5247_v16  ;;  %4453 = vmatpush3.bf16.msra.mxu0 %v4688_v17 }
 0x143   : > { %4454 = vmatprep.subr.bf16.mxu0 %v4691_v34 }
 0x144   : > { %4423 = vmatpush3.bf16.msra.mxu1 %v4690_v49 }
 0x145   : > { %4424 = vmatprep.subr.bf16.mxu1 %v4692_v26 }
 0x146   : > { %4455 = vmatpush3.bf16.msra.mxu0 %v4691_v34 }
 0x147   : > { %4377 = vmatmul.mubr.bf16.gmra.mxu1 %v1165_v60  ;;  %4456 = vmatprep.subr.bf16.mxu0 %v4694_v59 }
 0x148   : > { %4425 = vmatpush3.bf16.msra.mxu1 %v4692_v26  ;;  %4428 = vmatprep.mubr.bf16.mxu1 %v5154_v30  ;;  %v4699_v30 = vld [vmem:[%s6032_s5 + $0xb0] sm:$0xff]  }
 0x149   : > { %4409 = vmatmul.mubr.bf16.gmra.mxu0 %v5336_v22  ;;  %4426 = vmatprep.subr.bf16.mxu1 %v4695_v27 }
 0x14a   : > { %4457 = vmatpush3.bf16.msra.mxu0 %v4694_v59  ;;  %4460 = vmatprep.mubr.bf16.mxu0 %v5148_v25 }
 0x14b   : > { %4458 = vmatprep.subr.bf16.mxu0 %v4696_v2 }
 0x14c   : > { %4427 = vmatpush3.bf16.msra.mxu1 %v4695_v27 }
 0x14d   : > { %4476 = vmatprep.subr.bf16.mxu1 %v4697_v61 }
 0x14e   : > { %4459 = vmatpush3.bf16.msra.mxu0 %v4696_v2 }
 0x14f   : > { %4429 = vmatmul.mubr.bf16.vlgmr.msra.gmra.mxu1 %v5148_v25  ;;  %4508 = vmatprep.subr.bf16.mxu0 %v4698_v54  ;;  %v4702_v25 = vld [vmem:[%s6032_s5 + $0x168] sm:$0xff]  }
 0x150   : > { %4477 = vmatpush3.bf16.msra.mxu1 %v4697_v61  ;;  %4432 = vmatprep.mubr.bf16.mxu1 %v5199_v33 }
 0x151   : > { %4461 = vmatmul.mubr.bf16.vlgmr.msra.gmra.mxu0 %v5199_v33  ;;  %4478 = vmatprep.subr.bf16.mxu1 %v4699_v30  ;;  %v4704_v33 = vld [vmem:[%s6032_s5 + $0x160] sm:$0xff]  }
 0x152   : > { %4464 = vmatprep.mubr.bf16.mxu0 %v5189_v13  ;;  %4509 = vmatpush3.bf16.msra.mxu0 %v4698_v54 }
 0x153   : > { %4510 = vmatprep.subr.bf16.mxu0 %v4700_v44 }
 0x154   : > { %4479 = vmatpush3.bf16.msra.mxu1 %v4699_v30 }
 0x155   : > { %4480 = vmatprep.subr.bf16.mxu1 %v4701_v20 }
 0x156   : > { %4511 = vmatpush3.bf16.msra.mxu0 %v4700_v44 }
 0x157   : > { %4433 = vmatmul.mubr.bf16.gmra.mxu1 %v5189_v13  ;;  %4512 = vmatprep.subr.bf16.mxu0 %v4702_v25  ;;  %v4706_v13 = vld [vmem:[%s6032_s5 + $0x158] sm:$0xff]  }
 0x158   : > { %4481 = vmatpush3.bf16.msra.mxu1 %v4701_v20  ;;  %4436 = vmatprep.mubr.bf16.mxu1 %v5260_v55 }
 0x159   : > { %4465 = vmatmul.mubr.bf16.gmra.mxu0 %v5260_v55  ;;  %4482 = vmatprep.subr.bf16.mxu1 %v4703_v43  ;;  %v4709_v55 = vld [vmem:[%s6032_s5 + $0x150] sm:$0xff]  }
 0x15a   : > { %4468 = vmatprep.mubr.bf16.mxu0 %v5247_v16  ;;  %4513 = vmatpush3.bf16.msra.mxu0 %v4702_v25 }
 0x15b   : > { %4514 = vmatprep.subr.bf16.mxu0 %v4704_v33 }
 0x15c   : > { %4483 = vmatpush3.bf16.msra.mxu1 %v4703_v43 }
 0x15d   : > { %4484 = vmatprep.subr.bf16.mxu1 %v4705_v15 }
 0x15e   : > { %4515 = vmatpush3.bf16.msra.mxu0 %v4704_v33 }
 0x15f   : > { %4437 = vmatmul.mubr.bf16.gmra.mxu1 %v5247_v16  ;;  %4516 = vmatprep.subr.bf16.mxu0 %v4706_v13  ;;  %v4712_v16 = vld [vmem:[%s6032_s5 + $0x148] sm:$0xff]  }
 0x160   : > { %4485 = vmatpush3.bf16.msra.mxu1 %v4705_v15  ;;  %4440 = vmatprep.mubr.bf16.mxu1 %v5336_v22 }
 0x161   : > { %4469 = vmatmul.mubr.bf16.gmra.mxu0 %v5336_v22  ;;  %4486 = vmatprep.subr.bf16.mxu1 %v4708_v9  ;;  %v4714_v22 = vld [vmem:[%s6032_s5 + $0x140] sm:$0xff]  }
 0x162   : > { %4472 = vmatprep.mubr.bf16.mxu0 %v5317_v3  ;;  %4517 = vmatpush3.bf16.msra.mxu0 %v4706_v13 }
 0x163   : > { %4518 = vmatprep.subr.bf16.mxu0 %v4709_v55 }
 0x164   : > { %4487 = vmatpush3.bf16.msra.mxu1 %v4708_v9 }
 0x165   : > { %4488 = vmatprep.subr.bf16.mxu1 %v4710_v0 }
 0x166   : > { %4519 = vmatpush3.bf16.msra.mxu0 %v4709_v55 }
 0x167   : > { %4441 = vmatmul.mubr.bf16.gmra.mxu1 %v5317_v3  ;;  %4520 = vmatprep.subr.bf16.mxu0 %v4712_v16  ;;  %v4716_v3 = vld [vmem:[%s6032_s5 + $0x230] sm:$0xff]  }
 0x168   : > { %4489 = vmatpush3.bf16.msra.mxu1 %v4710_v0  ;;  %4492 = vmatprep.mubr.bf16.mxu1 %v2504_v42  ;;  %v4719_v42 = vld [vmem:[%s6032_s5 + $0x218] sm:$0xff]  }
 0x169   : > { %4473 = vmatmul.mubr.bf16.gmra.mxu0 %v5416_v36  ;;  %4490 = vmatprep.subr.bf16.mxu1 %v4713_v6  ;;  %v4721_v36 = vld [vmem:[%s6032_s5 + $0x208] sm:$0xff]  }
 0x16a   : > { %4521 = vmatpush3.bf16.msra.mxu0 %v4712_v16  ;;  %4524 = vmatprep.mubr.bf16.mxu0 %v5359_v31 }
 0x16b   : > { %4522 = vmatprep.subr.bf16.mxu0 %v4714_v22 }
 0x16c   : > { %4491 = vmatpush3.bf16.msra.mxu1 %v4713_v6 }
 0x16d   : > { %4540 = vmatprep.subr.bf16.mxu1 %v4715_v7 }
 0x16e   : > { %4523 = vmatpush3.bf16.msra.mxu0 %v4714_v22 }
 0x16f   : > { %4493 = vmatmul.mubr.bf16.vlgmr.msra.gmra.mxu1 %v5359_v31  ;;  %v4720_v31 = vld [vmem:[%s6032_s5 + $0x210] sm:$0xff]  }
 0x170   : > { %4541 = vmatpush3.bf16.msra.mxu1 %v4715_v7  ;;  %4496 = vmatprep.mubr.bf16.mxu1 %v5388_v57 }
 0x171   : > { %4525 = vmatmul.mubr.bf16.vlgmr.msra.gmra.mxu0 %v5388_v57  ;;  %4542 = vmatprep.subr.bf16.mxu1 %v4716_v3 }
 0x172   : > { %4528 = vmatprep.mubr.bf16.mxu0 %v5404_v21 }
 0x174   : > { %4543 = vmatpush3.bf16.msra.mxu1 %v4716_v3 }
 0x175   : > { %4544 = vmatprep.subr.bf16.mxu1 %v4717_v8 }
 0x177   : > { %4497 = vmatmul.mubr.bf16.gmra.mxu1 %v5404_v21 }
 0x178   : > { %4545 = vmatpush3.bf16.msra.mxu1 %v4717_v8  ;;  %4500 = vmatprep.mubr.bf16.mxu1 %v5429_v46 }
 0x179   : > { %4529 = vmatmul.mubr.bf16.gmra.mxu0 %v5429_v46  ;;  %4546 = vmatprep.subr.bf16.mxu1 %v4718_v37 }
 0x17a   : > { %4532 = vmatprep.mubr.bf16.mxu0 %v5444_v63 }
 0x17c   : > { %4547 = vmatpush3.bf16.msra.mxu1 %v4718_v37 }
 0x17d   : > { %4548 = vmatprep.subr.bf16.mxu1 %v4719_v42 }
 0x17f   : > { %4501 = vmatmul.mubr.bf16.gmra.mxu1 %v5444_v63 }
 0x180   : > { %4549 = vmatpush3.bf16.msra.mxu1 %v4719_v42  ;;  %4504 = vmatprep.mubr.bf16.mxu1 %v5452_v53 }
 0x181   : > { %4533 = vmatmul.mubr.bf16.gmra.mxu0 %v5452_v53  ;;  %4550 = vmatprep.subr.bf16.mxu1 %v4720_v31 }
 0x182   : > { %4536 = vmatprep.mubr.bf16.mxu0 %v5461_v1 }
 0x184   : > { %4551 = vmatpush3.bf16.msra.mxu1 %v4720_v31 }
 0x185   : > { %4552 = vmatprep.subr.bf16.mxu1 %v4721_v36 }
 0x187   : > { %4505 = vmatmul.mubr.bf16.gmra.mxu1 %v5461_v1 }
 0x188   : > { %4553 = vmatpush3.bf16.msra.mxu1 %v4721_v36  ;;  %4556 = vmatprep.mubr.bf16.mxu1 %v5388_v57 }
 0x189   : > { %4537 = vmatmul.mubr.bf16.gmra.mxu0 %v5480_v10  ;;  %4554 = vmatprep.subr.bf16.mxu1 %v4722_v50 }
 0x18c   : > { %4555 = vmatpush3.bf16.msra.mxu1 %v4722_v50 }
 0x18f   : > { %4557 = vmatmul.mubr.bf16.vlgmr.msra.gmra.mxu1 %v5404_v21 }
 0x190   : > { %4560 = vmatprep.mubr.bf16.mxu1 %v5429_v46 }
 0x197   : > { %4561 = vmatmul.mubr.bf16.gmra.mxu1 %v5444_v63 }
 0x198   : > { %4564 = vmatprep.mubr.bf16.mxu1 %v5452_v53 }
 0x19f   : > { %4565 = vmatmul.mubr.bf16.gmra.mxu1 %v5461_v1 }
 0x1a0   : > { %4568 = vmatprep.mubr.bf16.mxu1 %v5480_v10 }
 0x1a7   : > { %4569 = vmatmul.mubr.bf16.gmra.mxu1 %v2513_v62 }
 0x1cf   : > { %v4302_v57 = vpop.f32.mrf.mxu1 }
 0x1d1   : > { %v4334_v38 = vpop.f32.mrf.mxu0  ;;  %v1264_v51 = vpop.f32.mrf.mxu1 }
 0x1d2   : > { %v1523_v18 = vadd.f32 %v4334_v38, %v4302_v57 }
 0x1d3   : > { %v1442_v32 = vpop.f32.mrf.mxu0  ;;  %v4303_v21 = vpop.f32.mrf.mxu1 }
 0x1d4   : > { %v1521_v52 = vadd.f32 %v1442_v32, %v1264_v51 }
 0x1d5   : > { %v4335_v46 = vpop.f32.mrf.mxu0  ;;  %v1267_v5 = vpop.f32.mrf.mxu1 }
 0x1d6   : > { %v1524_v63 = vadd.f32 %v4335_v46, %v4303_v21 }
 0x1d7   : > { %v1445_v47 = vpop.f32.mrf.mxu0  ;;  %v4306_v53 = vpop.f32.mrf.mxu1 }
 0x1d8   : > { %v1522_v24 = vadd.f32 %v1445_v47, %v1267_v5 }
 0x1d9   : > { %v4338_v1 = vpop.f32.mrf.mxu0  ;;  %v1280_v39 = vpop.f32.mrf.mxu1 }
 0x1da   : > { %v1527_v40 = vadd.f32 %v4338_v1, %v4306_v53 }
 0x1db   : > { %v1458_v10 = vpop.f32.mrf.mxu0  ;;  %v4307_v19 = vpop.f32.mrf.mxu1 }
 0x1dc   : > { %v1525_v12 = vadd.f32 %v1458_v10, %v1280_v39 }
 0x1dd   : > { %v4339_v14 = vpop.f32.mrf.mxu0  ;;  %v1283_v62 = vpop.f32.mrf.mxu1 }
 0x1de   : > { %v1528_v4 = vadd.f32 %v4339_v14, %v4307_v19 }
 0x1df   : > { %v1461_v23 = vpop.f32.mrf.mxu0  ;;  %v4310_v41 = vpop.f32.mrf.mxu1 }
 0x1e0   : > { %v1526_v28 = vadd.f32 %v1461_v23, %v1283_v62 }
 0x1e1   : > { %v4342_v29 = vpop.f32.mrf.mxu0  ;;  %v1296_v45 = vpop.f32.mrf.mxu1 }
 0x1e2   : > { %v1531_v17 = vadd.f32 %v4342_v29, %v4310_v41 }
 0x1e3   : > { %v1474_v49 = vpop.f32.mrf.mxu0  ;;  %v4311_v35 = vpop.f32.mrf.mxu1 }
 0x1e4   : > { %v1529_v48 = vadd.f32 %v1474_v49, %v1296_v45 }
 0x1e5   : > { %v4343_v56 = vpop.f32.mrf.mxu0  ;;  %v1299_v34 = vpop.f32.mrf.mxu1 }
 0x1e6   : > { %v1532_v26 = vadd.f32 %v4343_v56, %v4311_v35 }
 0x1e7   : > { %v1477_v11 = vpop.f32.mrf.mxu0  ;;  %v4314_v58 = vpop.f32.mrf.mxu1 }
 0x1e8   : > { %v1530_v59 = vadd.f32 %v1477_v11, %v1299_v34 }
 0x1e9   : > { %v4346_v60 = vpop.f32.mrf.mxu0  ;;  %v1312_v27 = vpop.f32.mrf.mxu1 }
 0x1ea   : > { %v1535_v2 = vadd.f32 %v4346_v60, %v4314_v58 }
 0x1eb   : > { %v1490_v61 = vpop.f32.mrf.mxu0  ;;  %v4315_v54 = vpop.f32.mrf.mxu1 }
 0x1ec   : > { %v1533_v30 = vadd.f32 %v1490_v61, %v1312_v27 }
 0x1ed   : > { %v4347_v44 = vpop.f32.mrf.mxu0  ;;  %v1315_v20 = vpop.f32.mrf.mxu1 }
 0x1ee   : > { %v1536_v25 = vadd.f32 %v4347_v44, %v4315_v54 }
 0x1ef   : > { %v1493_v43 = vpop.f32.mrf.mxu0  ;;  %v4366_v33 = vpop.f32.mrf.mxu1 }
 0x1f0   : > { %v1534_v15 = vadd.f32 %v1493_v43, %v1315_v20  ;;  %v5669_v13 = vadd.f32 %v4366_v33, %v1523_v18 }
 0x1f1   : > { %v5671_v9 = vpop.f32.mrf.mxu0  ;;  %v1652_v55 = vpop.f32.mrf.mxu1 }
 0x1f2   : > { %v5673_v0 = vadd.f32 %v1652_v55, %v1521_v52 }
 0x1f3   : > { %v5675_v16 = vpop.f32.mrf.mxu0  ;;  %v4367_v6 = vpop.f32.mrf.mxu1 }
 0x1f4   : > { %v5677_v22 = vadd.f32 %v4367_v6, %v1524_v63 }
 0x1f5   : > { %v5679_v7 = vpop.f32.mrf.mxu0  ;;  %v1655_v3 = vpop.f32.mrf.mxu1 }
 0x1f6   : > { %v5681_v8 = vadd.f32 %v1655_v3, %v1522_v24 }
 0x1f7   : > { %v5683_v37 = vpop.f32.mrf.mxu0  ;;  %v4370_v42 = vpop.f32.mrf.mxu1 }
 0x1f8   : > { %v5685_v31 = vadd.f32 %v4370_v42, %v1527_v40 }
 0x1f9   : > { %v5687_v36 = vpop.f32.mrf.mxu0  ;;  %v1668_v50 = vpop.f32.mrf.mxu1 }
 0x1fa   : > { %v5689_v57 = vadd.f32 %v1668_v50, %v1525_v12 }
 0x1fb   : > { %v5691_v38 = vpop.f32.mrf.mxu0  ;;  %v4371_v51 = vpop.f32.mrf.mxu1 }
 0x1fc   : > { %v5693_v18 = vadd.f32 %v4371_v51, %v1528_v4 }
 0x1fd   : > { %v5695_v32 = vpop.f32.mrf.mxu0  ;;  %v1671_v21 = vpop.f32.mrf.mxu1 }
 0x1fe   : > { %v5697_v52 = vadd.f32 %v1671_v21, %v1526_v28 }
 0x1ff   : > { %v5699_v46 = vpop.f32.mrf.mxu0  ;;  %v4374_v5 = vpop.f32.mrf.mxu1 }
 0x200   : > { %v5701_v63 = vadd.f32 %v4374_v5, %v1531_v17 }
 0x201   : > { %v5703_v47 = vpop.f32.mrf.mxu0  ;;  %v1684_v53 = vpop.f32.mrf.mxu1 }
 0x202   : > { %v5705_v24 = vadd.f32 %v1684_v53, %v1529_v48 }
 0x203   : > { %v5707_v1 = vpop.f32.mrf.mxu0  ;;  %v4375_v39 = vpop.f32.mrf.mxu1 }
 0x204   : > { %v5709_v40 = vadd.f32 %v4375_v39, %v1532_v26 }
 0x205   : > { %v5711_v10 = vpop.f32.mrf.mxu0  ;;  %v1687_v19 = vpop.f32.mrf.mxu1 }
 0x206   : > { %v5713_v12 = vadd.f32 %v1687_v19, %v1530_v59 }
 0x207   : > { %v5715_v14 = vpop.f32.mrf.mxu0  ;;  %v4378_v62 = vpop.f32.mrf.mxu1 }
 0x208   : > { %v5717_v4 = vadd.f32 %v4378_v62, %v1535_v2 }
 0x209   : > { %v5719_v23 = vpop.f32.mrf.mxu0  ;;  %v1700_v41 = vpop.f32.mrf.mxu1 }
 0x20a   : > { %v5721_v28 = vadd.f32 %v1700_v41, %v1533_v30 }
 0x20b   : > { %v5723_v29 = vpop.f32.mrf.mxu0  ;;  %v4379_v45 = vpop.f32.mrf.mxu1 }
 0x20c   : > { %v5725_v17 = vadd.f32 %v4379_v45, %v1536_v25 }
 0x20d   : > { %v5727_v49 = vpop.f32.mrf.mxu0  ;;  %v1703_v35 = vpop.f32.mrf.mxu1 }
 0x20e   : > { %v5729_v48 = vadd.f32 %v1703_v35, %v1534_v15 }
 0x20f   : > { %v5731_v56 = vpop.f32.mrf.mxu0  ;;  %v4430_v34 = vpop.f32.mrf.mxu1 }
 0x211   : > { %v5733_v26 = vpop.f32.mrf.mxu0  ;;  %v2126_v11 = vpop.f32.mrf.mxu1 }
 0x213   : > { %v5735_v58 = vpop.f32.mrf.mxu0  ;;  %v5737_v59 = vpop.f32.mrf.mxu1 }
 0x215   : > { %v5739_v60 = vpop.f32.mrf.mxu0  ;;  %v5741_v27 = vpop.f32.mrf.mxu1 }
 0x217   : > { %v5743_v2 = vpop.f32.mrf.mxu0  ;;  %v5745_v61 = vpop.f32.mrf.mxu1 }
 0x219   : > { %v5747_v54 = vpop.f32.mrf.mxu0  ;;  %v5749_v30 = vpop.f32.mrf.mxu1 }
 0x21b   : > { %v5751_v44 = vpop.f32.mrf.mxu0  ;;  %v5753_v20 = vpop.f32.mrf.mxu1 }
 0x21d   : > { %v5755_v25 = vpop.f32.mrf.mxu0  ;;  %v5757_v43 = vpop.f32.mrf.mxu1 }
 0x21f   : > { %v5759_v33 = vpop.f32.mrf.mxu0  ;;  %v5761_v15 = vpop.f32.mrf.mxu1 }
 0x220   : > { %6040 = vst [vmem:[#allocation4_spill] sm:$0xff] %v5759_v33  ;;  %6041 = vst [vmem:[#allocation5_spill] sm:$0xff] %v5761_v15  ;;  %v5845_v15 = vld [vmem:[%s4913_s19 + $0x28] sm:$0xff]  }
 0x221   : > { %v5763_v55 = vpop.f32.mrf.mxu0  ;;  %v5765_v6 = vpop.f32.mrf.mxu1 }
 0x222   : > { %6042 = vst [vmem:[#allocation6_spill] sm:$0xff] %v5763_v55  ;;  %6043 = vst [vmem:[#allocation7_spill] sm:$0xff] %v5765_v6  ;;  %v5824_v6 = vld [vmem:[%s4913_s19 + $0x8] sm:$0xff]  }
 0x223   : > { %v5767_v3 = vpop.f32.mrf.mxu0  ;;  %v5769_v42 = vpop.f32.mrf.mxu1 }
 0x224   : > { %6044 = vst [vmem:[#allocation8_spill] sm:$0xff] %v5767_v3  ;;  %6045 = vst [vmem:[#allocation9_spill] sm:$0xff] %v5769_v42 }
 0x225   : > { %v5771_v50 = vpop.f32.mrf.mxu0  ;;  %v5773_v51 = vpop.f32.mrf.mxu1 }
 0x226   : > { %6046 = vst [vmem:[#allocation10_spill] sm:$0xff] %v5771_v50  ;;  %6047 = vst [vmem:[#allocation11_spill] sm:$0xff] %v5773_v51 }
 0x227   : > { %v5775_v21 = vpop.f32.mrf.mxu0  ;;  %v5777_v5 = vpop.f32.mrf.mxu1 }
 0x228   : > { %6048 = vst [vmem:[#allocation12_spill] sm:$0xff] %v5775_v21  ;;  %6049 = vst [vmem:[#allocation13_spill] sm:$0xff] %v5777_v5 }
 0x229   : > { %v5779_v53 = vpop.f32.mrf.mxu0  ;;  %v5781_v39 = vpop.f32.mrf.mxu1 }
 0x22a   : > { %6050 = vst [vmem:[#allocation14_spill] sm:$0xff] %v5779_v53  ;;  %6051 = vst [vmem:[#allocation15_spill] sm:$0xff] %v5781_v39 }
 0x22b   : > { %v5783_v19 = vpop.f32.mrf.mxu0  ;;  %v5785_v62 = vpop.f32.mrf.mxu1 }
 0x22c   : > { %6052 = vst [vmem:[#allocation16_spill] sm:$0xff] %v5783_v19  ;;  %6053 = vst [vmem:[#allocation17_spill] sm:$0xff] %v5785_v62 }
 0x22d   : > { %v5787_v41 = vpop.f32.mrf.mxu0  ;;  %v5789_v45 = vpop.f32.mrf.mxu1 }
 0x22e   : > { %6054 = vst [vmem:[#allocation18_spill] sm:$0xff] %v5787_v41  ;;  %6055 = vst [vmem:[#allocation19_spill] sm:$0xff] %v5789_v45 }
 0x22f   : > { %v5791_v35 = vpop.f32.mrf.mxu0  ;;  %v4494_v50 = vpop.f32.mrf.mxu1 }
 0x230   : > { %6056 = vst [vmem:[#allocation20_spill] sm:$0xff] %v5791_v35 }
 0x231   : > { %v5793_v3 = vpop.f32.mrf.mxu0  ;;  %v2613_v21 = vpop.f32.mrf.mxu1 }
 0x233   : > { %v5795_v55 = vpop.f32.mrf.mxu0  ;;  %v4495_v53 = vpop.f32.mrf.mxu1 }
 0x235   : > { %v5797_v5 = vpop.f32.mrf.mxu1  ;;  %v5799_v19 = vpop.f32.mrf.mxu0 }
 0x236   : > { %6057 = vst [vmem:[#allocation21_spill] sm:$0xff] %v5799_v19 }
 0x237   : > { %v5801_v62 = vpop.f32.mrf.mxu1  ;;  %v5805_v35 = vpop.f32.mrf.mxu0 }
 0x238   : > { %6058 = vst [vmem:[#allocation22_spill] sm:$0xff] %v5801_v62  ;;  %6060 = vst [vmem:[#allocation24_spill] sm:$0xff] %v5805_v35  ;;  %v1991_v62 = vadd.f32 %v5671_v9, %v5669_v13  ;;  %v5829_v35 = vld [vmem:[%s4913_s19] sm:$0xff]   ;;  %v1992_v13 = vadd.f32 %v5679_v7, %v5677_v22 }
 0x239   : > { %v5803_v41 = vpop.f32.mrf.mxu1  ;;  %v5811_v51 = vpop.f32.mrf.mxu0 }
 0x23a   : > { %6059 = vst [vmem:[#allocation23_spill] sm:$0xff] %v5803_v41  ;;  %6063 = vst [vmem:[#allocation27_spill] sm:$0xff] %v5811_v51  ;;  %v2208_v7 = vadd.f32 %v5737_v59, %v1992_v13 }
 0x23b   : > { %v5807_v45 = vpop.f32.mrf.mxu1  ;;  %v5819_v19 = vpop.f32.mrf.mxu0 }
 0x23c   : > { %6061 = vst [vmem:[#allocation25_spill] sm:$0xff] %v5807_v45  ;;  %6066 = vst [vmem:[#allocation30_spill] sm:$0xff] %v5819_v19  ;;  %v1989_v45 = vadd.f32 %v5675_v16, %v5673_v0  ;;  %v1990_v0 = vadd.f32 %v5683_v37, %v5681_v8 }
 0x23d   : > { %v5809_v39 = vpop.f32.mrf.mxu1  ;;  %v5841_v19 = vpop.f32.mrf.mxu0 }
 0x23e   : > { %6062 = vst [vmem:[#allocation26_spill] sm:$0xff] %v5809_v39  ;;  %v2207_v39 = vadd.f32 %v4430_v34, %v1991_v62  ;;  %v2205_v9 = vadd.f32 %v2126_v11, %v1989_v45  ;;  %6069 = vst [vmem:[#allocation33_spill] sm:$0xff] %v5841_v19  ;;  %v3938_v62 = vunpack.c.h.bf16 %v5824_v6  ;;  %v1999_v34 = vadd.f32 %v5703_v47, %v5701_v63 }
 0x23f   : > { %v5813_v33 = vpop.f32.mrf.mxu1  ;;  %v5869_v13 = vpop.f32.mrf.mxu0  ;;  %v2003_v47 = vadd.f32 %v5719_v23, %v5717_v4  ;;  %v5912_v23 = vld [vmem:[%s6033_s6] ss:$0 sm:$0xff] }
 0x240   : > { %6064 = vst [vmem:[#allocation28_spill] sm:$0xff] %v5813_v33  ;;  %v5834_v33 = vld [vmem:[%s4913_s19 + $0x18] sm:$0xff]   ;;  %v2423_v22 = vadd.f32 %v5733_v26, %v2207_v39  ;;  %v1993_v26 = vadd.f32 %v5691_v38, %v5689_v57  ;;  %v2421_v59 = vadd.f32 %v5735_v58, %v2205_v9  ;;  %v2424_v57 = vadd.f32 %v5739_v60, %v2208_v7  ;;  %v6076_v7 = vld [vmem:[#allocation13_spill] sm:$0xff] }
 0x241   : > { %v5815_v42 = vpop.f32.mrf.mxu1  ;;  %v3945_v11 = vunpack.c.l.bf16 %v5834_v33  ;;  %v3946_v8 = vunpack.c.h.bf16 %v5834_v33  ;;  %v4023_v33 = vld [vmem:[%s4913_s19 + $0x20] sm:$0xff]  }
 0x242   : > { %6065 = vst [vmem:[#allocation29_spill] sm:$0xff] %v5815_v42  ;;  %v5837_v42 = vld [vmem:[%s4913_s19 + $0x10] sm:$0xff]   ;;  %v2694_v39 = vadd.f32 %v4494_v50, %v2423_v22  ;;  %v2209_v58 = vadd.f32 %v5749_v30, %v1993_v26  ;;  %v2692_v50 = vadd.f32 %v2613_v21, %v2421_v59  ;;  %v2695_v60 = vadd.f32 %v4495_v53, %v2424_v57  ;;  %v6070_v30 = vld [vmem:[#allocation5_spill] sm:$0xff]  ;;  %v6073_v21 = vld [vmem:[#allocation4_spill] sm:$0xff] }
 0x243   : > { %v5821_v41 = vpop.f32.mrf.mxu1  ;;  %v3941_v45 = vunpack.c.l.bf16 %v5837_v42  ;;  %v3942_v37 = vunpack.c.h.bf16 %v5837_v42  ;;  %v6074_v53 = vld [vmem:[#allocation21_spill] sm:$0xff]  ;;  %v6077_v26 = vld [vmem:[#allocation24_spill] sm:$0xff]  ;;  %v6078_v59 = vld [vmem:[#allocation22_spill] sm:$0xff] }
 0x244   : > { %6067 = vst [vmem:[#allocation31_spill] sm:$0xff] %v5821_v41  ;;  %v2206_v41 = vadd.f32 %v5741_v27, %v1990_v0  ;;  %v1996_v27 = vadd.f32 %v5695_v32, %v5693_v18  ;;  %v1994_v0 = vadd.f32 %v5699_v46, %v5697_v52  ;;  %v2000_v18 = vadd.f32 %v5711_v10, %v5709_v40 }
 0x245   : > { %v5831_v51 = vpop.f32.mrf.mxu1  ;;  %v1998_v32 = vadd.f32 %v5715_v14, %v5713_v12  ;;  %v2001_v40 = vadd.f32 %v5723_v29, %v5721_v28  ;;  %v5902_v10 = vadd.f32 %v5727_v49, %v5725_v17  ;;  %v5906_v12 = vadd.f32 %v5731_v56, %v5729_v48  ;;  %v6071_v56 = vld [vmem:[#allocation7_spill] sm:$0xff] }
 0x246   : > { %6068 = vst [vmem:[#allocation32_spill] sm:$0xff] %v5831_v51  ;;  %v1995_v51 = vadd.f32 %v5687_v36, %v5685_v31  ;;  %v1997_v31 = vadd.f32 %v5707_v1, %v5705_v24  ;;  %v2422_v52 = vadd.f32 %v5743_v2, %v2206_v41  ;;  %v2212_v46 = vadd.f32 %v5753_v20, %v1996_v27 }
 0x247   : > { %v5849_v16 = vpop.f32.mrf.mxu1  ;;  %v2210_v24 = vadd.f32 %v5757_v43, %v1994_v0  ;;  %v2904_v1 = vadd.f32 %v5793_v3, %v2694_v39  ;;  %v2425_v28 = vadd.f32 %v5751_v44, %v2209_v58  ;;  %v2902_v29 = vadd.f32 %v5795_v55, %v2692_v50  ;;  %v6072_v43 = vld [vmem:[#allocation9_spill] sm:$0xff]  ;;  %v6075_v55 = vld [vmem:[#allocation11_spill] sm:$0xff]  ;;  %v6080_v50 = vld [vmem:[#allocation6_spill] sm:$0xff] }
 0x248   : > { %v2211_v38 = vadd.f32 %v5745_v61, %v1995_v51  ;;  %v5896_v61 = vpop.f32.mrf.mxu0  ;;  %v2693_v14 = vadd.f32 %v5797_v5, %v2422_v52  ;;  %v2428_v49 = vadd.f32 %v5755_v25, %v2212_v46  ;;  %v2215_v48 = vadd.f32 %v6070_v30, %v1999_v34  ;;  %v6079_v0 = vld [vmem:[#allocation23_spill] sm:$0xff]  ;;  %v6081_v52 = vld [vmem:[#allocation8_spill] sm:$0xff] }
 0x249   : > { %v5859_v19 = vpop.f32.mrf.mxu1  ;;  %v2213_v20 = vadd.f32 %v6071_v56, %v1997_v31  ;;  %v2216_v3 = vadd.f32 %v6072_v43, %v2000_v18  ;;  %v2426_v5 = vadd.f32 %v6073_v21, %v2210_v24  ;;  %v2905_v41 = vadd.f32 %v6074_v53, %v2695_v60  ;;  %v6082_v24 = vld [vmem:[#allocation10_spill] sm:$0xff]  ;;  %v6085_v30 = vld [vmem:[#allocation12_spill] sm:$0xff]  ;;  %v6086_v43 = vld [vmem:[#allocation27_spill] sm:$0xff] }
 0x24a   : > { %v2427_v2 = vadd.f32 %v5747_v54, %v2211_v38  ;;  %v5923_v9 = vpop.f32.mrf.mxu0  ;;  %v2214_v22 = vadd.f32 %v6075_v55, %v1998_v32  ;;  %v2219_v25 = vadd.f32 %v6076_v7, %v2003_v47  ;;  %v2903_v34 = vadd.f32 %v6077_v26, %v2693_v14  ;;  %v6083_v32 = vld [vmem:[#allocation15_spill] sm:$0xff]  ;;  %v6087_v21 = vld [vmem:[#allocation26_spill] sm:$0xff]  ;;  %v6090_v7 = vld [vmem:[#allocation16_spill] sm:$0xff] }
 0x24b   : > { %v5879_v36 = vpop.f32.mrf.mxu1  ;;  %v2696_v31 = vadd.f32 %v6079_v0, %v2425_v28  ;;  %v2431_v18 = vadd.f32 %v6080_v50, %v2215_v48  ;;  %v2429_v46 = vadd.f32 %v6081_v52, %v2213_v20  ;;  %v2217_v60 = vadd.f32 %v6083_v32, %v2001_v40 }
 0x24c   : > { %v2698_v39 = vadd.f32 %v6078_v59, %v2427_v2  ;;  %v2430_v56 = vadd.f32 %v6085_v30, %v2214_v22  ;;  %v2697_v48 = vadd.f32 %v6087_v21, %v2426_v5  ;;  %v6091_v59 = vld [vmem:[#allocation28_spill] sm:$0xff] }
 0x24d   : > { %v5890_v63 = vpop.f32.mrf.mxu1  ;;  %v2433_v26 = vadd.f32 %v6090_v7, %v2217_v60 }
 0x24f   : > { %v4558_v4 = vpop.f32.mrf.mxu1 }
 0x250   : > { %v3114_v17 = vadd.f32 %v4558_v4, %v2904_v1  ;;  %v2432_v1 = vadd.f32 %v6082_v24, %v2216_v3  ;;  %v6084_v4 = vld [vmem:[#allocation25_spill] sm:$0xff]  ;;  %v6094_v24 = vunpack.c.l.bf16 %v5824_v6 }
 0x251   : > { %v3033_v51 = vpop.f32.mrf.mxu1  ;;  %v2699_v14 = vadd.f32 %v6084_v4, %v2428_v49 }
 0x252   : > { %v3169_v54 = vadd.f32 %v5912_v23, %v3114_v17  ;;  %v3112_v44 = vadd.f32 %v3033_v51, %v2902_v29  ;;  %v4535_v29 = vpop.f32.mrf.mxu0  ;;  %v2908_v51 = vadd.f32 %v6086_v43, %v2698_v39 }
 0x253   : > { %v4559_v27 = vpop.f32.mrf.mxu1 }
 0x254   : > { %v3185_v57 = vmul.f32 0.1, %v3169_v54  ;;  %v3167_v38 = vadd.f32 %v5912_v23, %v3112_v44  ;;  %v3115_v58 = vadd.f32 %v4559_v27, %v2905_v41  ;;  %v6088_v41 = vld [vmem:[#allocation14_spill] sm:$0xff]  ;;  %v2702_v27 = vadd.f32 %v6091_v59, %v2431_v18  ;;  %v2858_v50 = vpop.f32.mrf.mxu0 }
 0x255   : > { %v3036_v47 = vpop.f32.mrf.mxu1  ;;  %v2435_v3 = vadd.f32 %v6088_v41, %v2219_v25  ;;  %v6089_v44 = vld [vmem:[#allocation30_spill] sm:$0xff]  ;;  %v2907_v25 = vadd.f32 %v5869_v13, %v2697_v48  ;;  %v6096_v13 = vunpack.c.l.bf16 %v5829_v35  ;;  %v6098_v48 = vld [vmem:[#allocation17_spill] sm:$0xff] }
 0x256   : > { %v3183_v2 = vmul.f32 0.1, %v3167_v38  ;;  %v3170_v17 = vadd.f32 %v5912_v23, %v3115_v58  ;;  %v3113_v28 = vadd.f32 %v3036_v47, %v2903_v34  ;;  %v3201_v53 = vmax.f32 %v3169_v54, %v3185_v57  ;;  %v6092_v58 = vld [vmem:[#allocation33_spill] sm:$0xff]  ;;  %v4538_v30 = vpop.f32.mrf.mxu0 }
 0x257   : > { %v4562_v20 = vpop.f32.mrf.mxu1  ;;  %v2906_v40 = vadd.f32 %v6089_v44, %v2696_v31  ;;  %v2909_v39 = vadd.f32 %v6092_v58, %v2699_v14  ;;  %v6093_v31 = vld [vmem:[#allocation29_spill] sm:$0xff] }
 0x258   : > { %v3186_v55 = vmul.f32 0.1, %v3170_v17  ;;  %v3168_v49 = vadd.f32 %v5912_v23, %v3113_v28  ;;  %v3199_v34 = vmax.f32 %v3167_v38, %v3183_v2  ;;  %v3118_v0 = vadd.f32 %v4562_v20, %v2908_v51  ;;  %v6099_v20 = vld [vmem:[#allocation19_spill] sm:$0xff] }
 0x259   : > { %v3049_v22 = vpop.f32.mrf.mxu1  ;;  %v2700_v52 = vadd.f32 %v6093_v31, %v2429_v46  ;;  %v3249_v32 = vadd.f32 %v6094_v24, %v3201_v53  ;;  %v2912_v2 = vadd.f32 %v5896_v61, %v2702_v27  ;;  %v6097_v51 = vunpack.c.h.bf16 %v5829_v35 }
 0x25a   : > { %v3202_v5 = vmax.f32 %v3170_v17, %v3186_v55  ;;  %v3184_v54 = vmul.f32 0.1, %v3168_v49  ;;  %v3116_v57 = vadd.f32 %v3049_v22, %v2906_v40  ;;  %v3173_v60 = vadd.f32 %v5912_v23, %v3118_v0  ;;  %v6095_v17 = vld [vmem:[#allocation31_spill] sm:$0xff] }
 0x25b   : > { %v4563_v18 = vpop.f32.mrf.mxu1  ;;  %v2703_v28 = vadd.f32 %v6095_v17, %v2432_v1  ;;  %v3247_v46 = vadd.f32 %v6096_v13, %v3199_v34  ;;  %v2220_v53 = vadd.f32 %v6098_v48, %v5902_v10  ;;  %v2218_v41 = vadd.f32 %v6099_v20, %v5906_v12  ;;  %v6100_v34 = vld [vmem:[#allocation32_spill] sm:$0xff] }
 0x25c   : > { %v3250_v38 = vadd.f32 %v3938_v62, %v3202_v5  ;;  %v3200_v47 = vmax.f32 %v3168_v49, %v3184_v54  ;;  %v3171_v4 = vadd.f32 %v5912_v23, %v3116_v57  ;;  %v3119_v14 = vadd.f32 %v4563_v18, %v2909_v39  ;;  %v2871_v39 = vpop.f32.mrf.mxu0 }
 0x25d   : > { %v3189_v6 = vmul.f32 0.1, %v3173_v60  ;;  %v3052_v62 = vpop.f32.mrf.mxu1  ;;  %v2910_v49 = vadd.f32 %v5923_v9, %v2700_v52  ;;  %v2913_v27 = vadd.f32 %v4535_v29, %v2703_v28  ;;  %v2701_v0 = vadd.f32 %v6100_v34, %v2430_v56  ;;  %v6101_v9 = vld [vmem:[#allocation18_spill] sm:$0xff] }
 0x25e   : > { %v3971_v43 = vpack.c.bf16 %v3250_v38, %v3249_v32  ;;  %v3248_v21 = vadd.f32 %v6097_v51, %v3200_v47  ;;  %v3187_v61 = vmul.f32 0.1, %v3171_v4  ;;  %v3174_v1 = vadd.f32 %v5912_v23, %v3119_v14 }
 0x25f   : > { %v3205_v44 = vmax.f32 %v3173_v60, %v3189_v6  ;;  %v3117_v40 = vadd.f32 %v3052_v62, %v2907_v25  ;;  %v4566_v55 = vpop.f32.mrf.mxu1  ;;  %v2706_v22 = vadd.f32 %v5849_v16, %v2435_v3  ;;  %v2436_v25 = vadd.f32 %v6101_v9, %v2220_v53  ;;  %v6102_v60 = vld [vmem:[#allocation20_spill] sm:$0xff]  ;;  %v4025_v9 = vld [vmem:[%s4913_s19 + $0x30] sm:$0xff]  }
 0x260   : > { %4027 = vst [vmem:[%s5964_s16 + $0x8] sm:$0xff] %v3971_v43   ;;  %v3966_v7 = vpack.c.bf16 %v3248_v21, %v3247_v46  ;;  %v3190_v59 = vmul.f32 0.1, %v3174_v1  ;;  %v3122_v35 = vadd.f32 %v4566_v55, %v2912_v2  ;;  %v3203_v12 = vmax.f32 %v3171_v4, %v3187_v61 }
 0x261   : > { %v3172_v10 = vadd.f32 %v5912_v23, %v3117_v40  ;;  %v3065_v58 = vpop.f32.mrf.mxu1  ;;  %v2704_v31 = vadd.f32 %v5859_v19, %v2433_v26  ;;  %v3253_v29 = vadd.f32 %v3945_v11, %v3205_v44  ;;  %v2434_v18 = vadd.f32 %v6102_v60, %v2218_v41  ;;  %v4539_v11 = vpop.f32.mrf.mxu0 }
 0x262   : > { %3967 = vst [vmem:[%s5964_s16] sm:$0xff] %v3966_v7   ;;  %v3206_v5 = vmax.f32 %v3174_v1, %v3190_v59  ;;  %v3177_v54 = vadd.f32 %v5912_v23, %v3122_v35  ;;  %v3120_v57 = vadd.f32 %v3065_v58, %v2910_v49  ;;  %v2911_v38 = vadd.f32 %v2858_v50, %v2701_v0  ;;  %v4026_v0 = vld [vmem:[%s4913_s19 + $0x38] sm:$0xff]  }
 0x263   : > { %v3188_v56 = vmul.f32 0.1, %v3172_v10  ;;  %v4567_v16 = vpop.f32.mrf.mxu1  ;;  %v2916_v47 = vadd.f32 %v4538_v30, %v2706_v22  ;;  %v2707_v26 = vadd.f32 %v5879_v36, %v2436_v25  ;;  %v3251_v14 = vadd.f32 %v3941_v45, %v3203_v12 }
 0x264   : > { %v3254_v3 = vadd.f32 %v3946_v8, %v3206_v5  ;;  %v3193_v52 = vmul.f32 0.1, %v3177_v54  ;;  %v3175_v24 = vadd.f32 %v5912_v23, %v3120_v57  ;;  %v3123_v32 = vadd.f32 %v4567_v16, %v2913_v27 }
 0x265   : > { %v3204_v4 = vmax.f32 %v3172_v10, %v3188_v56  ;;  %v3068_v19 = vpop.f32.mrf.mxu1  ;;  %v2914_v6 = vadd.f32 %v2871_v39, %v2704_v31  ;;  %v3954_v36 = vunpack.c.h.bf16 %v5845_v15  ;;  %v2705_v45 = vadd.f32 %v5890_v63, %v2434_v18 }
 0x266   : > { %v3981_v2 = vpack.c.bf16 %v3254_v3, %v3253_v29  ;;  %v3178_v8 = vadd.f32 %v5912_v23, %v3123_v32  ;;  %v3209_v28 = vmax.f32 %v3177_v54, %v3193_v52  ;;  %v3191_v13 = vmul.f32 0.1, %v3175_v24 }
 0x267   : > { %v3252_v17 = vadd.f32 %v3942_v37, %v3204_v4  ;;  %v3121_v50 = vadd.f32 %v3068_v19, %v2911_v38  ;;  %v4570_v46 = vpop.f32.mrf.mxu1  ;;  %v3949_v51 = vunpack.c.l.bf16 %v4023_v33  ;;  %v2917_v42 = vadd.f32 %v4539_v11, %v2707_v26  ;;  %v2874_v37 = vpop.f32.mrf.mxu0 }
 0x268   : > { %4029 = vst [vmem:[%s5964_s16 + $0x18] sm:$0xff] %v3981_v2   ;;  %v3194_v62 = vmul.f32 0.1, %v3178_v8  ;;  %v3126_v30 = vadd.f32 %v4570_v46, %v2916_v47  ;;  %v6103_v20 = vunpack.c.l.bf16 %v5845_v15  ;;  %v3207_v44 = vmax.f32 %v3175_v24, %v3191_v13 }
 0x269   : > { %v3976_v43 = vpack.c.bf16 %v3252_v17, %v3251_v14  ;;  %v3176_v21 = vadd.f32 %v5912_v23, %v3121_v50  ;;  %v3081_v61 = vpop.f32.mrf.mxu1  ;;  %v3950_v55 = vunpack.c.h.bf16 %v4023_v33  ;;  %v2915_v27 = vadd.f32 %v2874_v37, %v2705_v45 }
 0x26a   : > { %v3210_v1 = vmax.f32 %v3178_v8, %v3194_v62  ;;  %v3181_v48 = vadd.f32 %v5912_v23, %v3126_v30  ;;  %v3124_v53 = vadd.f32 %v3081_v61, %v2914_v6  ;;  %v3257_v41 = vadd.f32 %v6103_v20, %v3209_v28 }
 0x26b   : > { %4028 = vst [vmem:[%s5964_s16 + $0x10] sm:$0xff] %v3976_v43   ;;  %v3192_v40 = vmul.f32 0.1, %v3176_v21  ;;  %v4571_v63 = vpop.f32.mrf.mxu1  ;;  %v3255_v58 = vadd.f32 %v3949_v51, %v3207_v44  ;;  %v3961_v57 = vunpack.c.l.bf16 %v4026_v0  ;;  %v3962_v31 = vunpack.c.h.bf16 %v4026_v0 }
 0x26c   : > { %v3258_v49 = vadd.f32 %v3954_v36, %v3210_v1  ;;  %v3197_v7 = vmul.f32 0.1, %v3181_v48  ;;  %v3179_v59 = vadd.f32 %v5912_v23, %v3124_v53  ;;  %v3127_v35 = vadd.f32 %v4571_v63, %v2917_v42 }
 0x26d   : > { %v3208_v34 = vmax.f32 %v3176_v21, %v3192_v40  ;;  %v3084_v22 = vpop.f32.mrf.mxu1  ;;  %v3957_v52 = vunpack.c.l.bf16 %v4025_v9  ;;  %v3958_v32 = vunpack.c.h.bf16 %v4025_v9 }
 0x26e   : > { %v3991_v10 = vpack.c.bf16 %v3258_v49, %v3257_v41  ;;  %v3182_v15 = vadd.f32 %v5912_v23, %v3127_v35  ;;  %v3195_v12 = vmul.f32 0.1, %v3179_v59  ;;  %v3125_v5 = vadd.f32 %v3084_v22, %v2915_v27 }
 0x26f   : > { %v3256_v39 = vadd.f32 %v3950_v55, %v3208_v34  ;;  %v3213_v54 = vmax.f32 %v3181_v48, %v3197_v7 }
 0x270   : > { %4031 = vst [vmem:[%s5964_s16 + $0x28] sm:$0xff] %v3991_v10   ;;  %v3198_v25 = vmul.f32 0.1, %v3182_v15  ;;  %v3180_v56 = vadd.f32 %v5912_v23, %v3125_v5  ;;  %v3211_v3 = vmax.f32 %v3179_v59, %v3195_v12 }
 0x271   : > { %v3986_v29 = vpack.c.bf16 %v3256_v39, %v3255_v58  ;;  %v3261_v60 = vadd.f32 %v3961_v57, %v3213_v54 }
 0x272   : > { %v3214_v16 = vmax.f32 %v3182_v15, %v3198_v25  ;;  %v3196_v24 = vmul.f32 0.1, %v3180_v56  ;;  %v3259_v4 = vadd.f32 %v3957_v52, %v3211_v3 }
 0x273   : > { %4030 = vst [vmem:[%s5964_s16 + $0x20] sm:$0xff] %v3986_v29  }
 0x274   : > { %v3262_v18 = vadd.f32 %v3962_v31, %v3214_v16  ;;  %v3212_v38 = vmax.f32 %v3180_v56, %v3196_v24 }
 0x276   : > { %v4001_v47 = vpack.c.bf16 %v3262_v18, %v3261_v60  ;;  %v3260_v19 = vadd.f32 %v3958_v32, %v3212_v38 }
 0x278   : > { %4033 = vst [vmem:[%s5964_s16 + $0x38] sm:$0xff] %v4001_v47   ;;  %v3996_v26 = vpack.c.bf16 %v3260_v19, %v3259_v4 }
 0x27a   : > { %4032 = vst [vmem:[%s5964_s16 + $0x30] sm:$0xff] %v3996_v26  }
 0x27b PF: > { %s17_s28 = sadd.s32 1, %s4771_s28   ;;  %s6104_s24 = smov %s4763_s26 }
 0x27c   : > { %p14_p12 = scmp.ge.s32.totalorder %s17_s28, 6   ;;  %s6105_s25 = smov %s4767_s27 }
 0x27d   : > { %s6106_s26 = smov %s6109_s29  ;;  %s6107_s27 = smov %s6113_s30 }
 0x27e   :  { %16 = sbr.rel (!%p14_p12) target bundleno = 3 (0x3), region = 94 }

</bundles_post_ra>
